<compile_context>
chip_gen: v6e
topology: v6e:2x2x1
jax: 0.10.0
libtpu: 0.0.40
codegen_flags: <defaults>
</compile_context>

<pallas_src>
import jax
import jax.numpy as jnp
import numpy as np
from jax.experimental import pallas as pl
from jax.experimental.pallas import tpu as pltpu

# ---------------- small synthetic config (consistent with the module) --------
N = 128                      # number of points
C_FEAT = 26                  # per-point feature channels
C_IN = C_FEAT + 6            # + local_offset(3) + sim_points(3) = 32
H1 = 32                      # nn_channels = [32, 32, 16]
F_OUT = 16
H2P = 32                     # layer-2 width padded (col F_OUT = count column)
BATCH = 2
GRID_SHAPE = (8, 8, 8)
LOWER = (0.0, 0.0, 0.0)
UPPER = (1.0, 1.0, 1.0)
NUM_GRIDS = BATCH * GRID_SHAPE[0] * GRID_SHAPE[1] * GRID_SHAPE[2]
BN_EPS = 1e-5
G_CHUNK = 256                # scatter column tile (lane-dense, 2x128)
NUM_CHUNKS = NUM_GRIDS // G_CHUNK

# point-slab lane layout (width SLAB_W):
#   lanes 0:3   pred_nocs  (becomes local_offset in-kernel)   -> W1 rows 26:29
#   lanes 3:29  per_point_features                            -> W1 rows  0:26
#   lanes 29:32 sim_points (xyz)                              -> W1 rows 29:32
#   lane  32    batch_idx (float, zero weight row)
#   lanes 33:64 zero padding
SLAB_W = 64
BIDX_LANE = 32
GEO_ROW = 6                  # first geometry row inside the param tile
PTAB_ROWS = 16

# geometry constants shared bit-exactly by packer and reference
_LOWER_NP = np.asarray(LOWER, np.float32)
_UPPER_NP = np.asarray(UPPER, np.float32)
_GS_NP = np.asarray(GRID_SHAPE, np.float32)
_SCALE_NP = ((_UPPER_NP - _LOWER_NP) / (_GS_NP - np.float32(1.0))).astype(np.float32)
_INV_SCALE_NP = (np.float32(1.0) / _SCALE_NP).astype(np.float32)
_FLAT_MULT_NP = np.asarray(
    [GRID_SHAPE[1] * GRID_SHAPE[2], GRID_SHAPE[2], 1.0], np.float32)
_DHW = float(GRID_SHAPE[0] * GRID_SHAPE[1] * GRID_SHAPE[2])


# ------------------------------- kernel --------------------------------------
def _volume_agg_kernel(slab_ref, wtab_ref, ptab_ref, out_ref):
    f32 = jnp.float32
    x = slab_ref[...]                                   # (N, SLAB_W)

    lower = ptab_ref[GEO_ROW + 0:GEO_ROW + 1, :]        # (1, SLAB_W)
    scale = ptab_ref[GEO_ROW + 1:GEO_ROW + 2, :]
    inv_scale = ptab_ref[GEO_ROW + 2:GEO_ROW + 3, :]
    gmax = ptab_ref[GEO_ROW + 3:GEO_ROW + 4, :]
    fmult = ptab_ref[GEO_ROW + 4:GEO_ROW + 5, :]

    # VirtualGrid.get_points_grid_idxs: round((p - lower)/scale), clip to grid.
    # Computed at full slab width: non-nocs lanes have inv_scale = gmax = 0 so
    # their "index" is 0 (the batch-idx lane uses inv_scale=1, gmax=BATCH-1).
    idx_f = jnp.clip(jnp.round((x - lower) * inv_scale), 0.0, gmax)   # (N, SLAB_W)

    # VirtualGrid.idxs_to_points -> local offset, in place:
    #   lanes 0:3   : nocs - (idx*scale + lower) = local_offset
    #   other lanes : unchanged (scale = lower = 0 there)
    feat = x - (idx_f * scale + lower)                                # (N, SLAB_W)

    # flat voxel id = bidx*D*H*W + i*H*W + j*W + k  (exact in f32, << 2^24)
    flat = jnp.sum(idx_f * fmult, axis=-1, keepdims=True).astype(jnp.int32)  # (N,1)

    # --- MLP layer 1: Linear(32->32) + ReLU + PointBatchNorm1D (batch stats)
    h = jnp.dot(feat, wtab_ref[0:SLAB_W, :], preferred_element_type=f32)     # (N,H1)
    h = jnp.maximum(h + ptab_ref[0:1, 0:H1], 0.0)
    mu = jnp.mean(h, axis=0, keepdims=True)
    d = h - mu
    var = jnp.mean(d * d, axis=0, keepdims=True)
    h = d * (jax.lax.rsqrt(var + BN_EPS) * ptab_ref[1:2, 0:H1]) + ptab_ref[2:3, 0:H1]

    # --- MLP layer 2 (padded to 32 cols; col F_OUT -> all-ones count column
    #     through the BN affine: w=0, b=0 -> d=0, var=0, beta=1).
    h = jnp.dot(h, wtab_ref[SLAB_W:SLAB_W + H1, :], preferred_element_type=f32)  # (N,H2P)
    h = jnp.maximum(h + ptab_ref[3:4, 0:H2P], 0.0)
    mu = jnp.mean(h, axis=0, keepdims=True)
    d = h - mu
    var = jnp.mean(d * d, axis=0, keepdims=True)
    hp = d * (jax.lax.rsqrt(var + BN_EPS) * ptab_ref[4:5, 0:H2P]) + ptab_ref[5:6, 0:H2P]
    # hp lanes: 0:F_OUT features, F_OUT exact 1.0 (count), F_OUT+1: zeros

    # --- torch_scatter.scatter(reduce='mean') as chunked one-hot MXU matmuls.
    base_iota = jax.lax.broadcasted_iota(jnp.int32, (N, G_CHUNK), 1)  # hoisted

    def scatter_chunk(c, carry):
        one_hot = ((flat - c * G_CHUNK) == base_iota).astype(f32)     # (N, Gc)
        sums = jax.lax.dot_general(hp, one_hot, (((0,), (0,)), ((), ())),
                                   preferred_element_type=f32)         # (H2P, Gc)
        counts = sums[F_OUT:F_OUT + 1, :]                              # fused count row
        inv = pl.reciprocal(jnp.maximum(counts, 1.0), approx=True)
        out_ref[c, :, :] = sums[0:F_OUT, :] * inv                      # 0 for empty cells
        return carry

    jax.lax.fori_loop(0, NUM_CHUNKS, scatter_chunk, 0, unroll=True)


# --------------------- one-time parameter packing (module init) --------------
def pack_params(params):
    """Pack MLP weights + geometry into 2 device arrays. Call ONCE at init."""
    w1, b1, g1, be1, w2, b2, g2, be2 = [jnp.asarray(p, jnp.float32) for p in params]

    # W1 rows permuted into slab lane order [local_off | ppf | sim_points | 0...]
    w_a = jnp.zeros((SLAB_W, H1), jnp.float32)
    w_a = w_a.at[0:3, :].set(w1[C_FEAT:C_FEAT + 3])                 # local_offset
    w_a = w_a.at[3:3 + C_FEAT, :].set(w1[0:C_FEAT])                 # per-point feats
    w_a = w_a.at[3 + C_FEAT:3 + C_FEAT + 3, :].set(w1[C_FEAT + 3:C_FEAT + 6])  # xyz
    # W2 padded to H2P cols; col F_OUT stays zero -> becomes the count column.
    w2p = jnp.zeros((H1, H2P), jnp.float32).at[:, 0:F_OUT].set(w2)
    wtab = jnp.concatenate([w_a, w2p], axis=0)                      # (96, 32)

    ptab = np.zeros((PTAB_ROWS, SLAB_W), np.float32)
    ptab[0, 0:H1] = np.asarray(b1)
    ptab[1, 0:H1] = np.asarray(g1)
    ptab[2, 0:H1] = np.asarray(be1)
    ptab[3, 0:F_OUT] = np.asarray(b2)
    ptab[4, 0:F_OUT] = np.asarray(g2)
    ptab[5, 0:F_OUT] = np.asarray(be2)
    ptab[5, F_OUT] = 1.0                                            # ones column beta
    ptab[GEO_ROW + 0, 0:3] = _LOWER_NP
    ptab[GEO_ROW + 1, 0:3] = _SCALE_NP
    ptab[GEO_ROW + 2, 0:3] = _INV_SCALE_NP
    ptab[GEO_ROW + 2, BIDX_LANE] = 1.0                              # pass-through bidx
    ptab[GEO_ROW + 3, 0:3] = _GS_NP - np.float32(1.0)
    ptab[GEO_ROW + 3, BIDX_LANE] = float(BATCH - 1)
    ptab[GEO_ROW + 4, 0:3] = _FLAT_MULT_NP
    ptab[GEO_ROW + 4, BIDX_LANE] = _DHW
    return wtab, jnp.asarray(ptab)


# ------------------------------ per-call wrapper ------------------------------
def _pack_points(xyz, pred_nocs, per_point_features, batch_idx):
    n = xyz.shape[0]
    f32 = jnp.float32
    return jnp.concatenate([
        pred_nocs.astype(f32),                            # lanes 0:3
        per_point_features.astype(f32),                   # lanes 3:29
        xyz.astype(f32),                                  # lanes 29:32
        batch_idx.reshape(n, 1).astype(f32),              # lane 32
        jnp.zeros((n, SLAB_W - (C_IN + 1)), f32),         # lanes 33:64
    ], axis=-1)


def volume_feature_aggregator(xyz, pred_nocs, per_point_features,
                              pred_confidence, batch_idx, packed_params):
    del pred_confidence  # include_confidence_feature=False (module default)
    wtab, ptab = packed_params
    slab = _pack_points(xyz, pred_nocs, per_point_features, batch_idx)

    out3 = pl.pallas_call(
        _volume_agg_kernel,
        out_shape=jax.ShapeDtypeStruct((NUM_CHUNKS, F_OUT, G_CHUNK), jnp.float32),
        grid=(1,),
        in_specs=[pl.BlockSpec(slab.shape, lambda i: (0, 0)),
                  pl.BlockSpec(wtab.shape, lambda i: (0, 0)),
                  pl.BlockSpec(ptab.shape, lambda i: (0, 0))],
        out_specs=pl.BlockSpec((NUM_CHUNKS, F_OUT, G_CHUNK), lambda i: (0, 0, 0)),
        compiler_params=pltpu.CompilerParams(
            dimension_semantics=("arbitrary",)),
    )(slab, wtab, ptab)

    d, hh, w = GRID_SHAPE
    volume_flat = out3.transpose(1, 0, 2).reshape(F_OUT, NUM_GRIDS)  # (F, B*D*H*W)
    # same as torch: (F, B, D, H, W) -> permute -> (B, F, D, H, W)
    return volume_flat.reshape(F_OUT, BATCH, d, hh, w).transpose(1, 0, 2, 3, 4)


# ------------------------------ pure-JAX reference ----------------------------
def _reference(xyz, nocs, ppf, batch_idx, params):
    w1, b1, g1, be1, w2, b2, g2, be2 = params
    lower = jnp.asarray(_LOWER_NP)
    scale = jnp.asarray(_SCALE_NP)
    inv_scale = jnp.asarray(_INV_SCALE_NP)
    gs_i = jnp.asarray(GRID_SHAPE, jnp.int32)
    idx = jnp.clip(jnp.round((nocs - lower) * inv_scale).astype(jnp.int32),
                   0, gs_i - 1)
    grid_pts = idx.astype(jnp.float32) * scale + lower
    local_off = nocs - grid_pts
    feat = jnp.concatenate([ppf, local_off, xyz], axis=-1)

    def layer(x, w, b, g, be):
        h = jnp.maximum(x @ w + b, 0.0)
        mu = h.mean(0, keepdims=True)
        var = ((h - mu) ** 2).mean(0, keepdims=True)
        return (h - mu) / jnp.sqrt(var + BN_EPS) * g + be

    h = layer(feat, w1, b1, g1, be1)
    h = layer(h, w2, b2, g2, be2)
    d, hh, w = GRID_SHAPE
    flat = (batch_idx * (d * hh * w) + idx[:, 0] * (hh * w)
            + idx[:, 1] * w + idx[:, 2])
    sums = jax.ops.segment_sum(h, flat, num_segments=NUM_GRIDS)
    counts = jax.ops.segment_sum(jnp.ones((xyz.shape[0],), jnp.float32), flat,
                                 num_segments=NUM_GRIDS)
    mean = sums / jnp.maximum(counts, 1.0)[:, None]
    return mean.reshape(BATCH, d, hh, w, F_OUT).transpose(0, 4, 1, 2, 3)


if __name__ == "__main__":
    key = jax.random.PRNGKey(0)
    ks = jax.random.split(key, 13)
    xyz = jax.random.normal(ks[0], (N, 3), jnp.float32)          # sim points
    pred_nocs = jax.random.uniform(ks[1], (N, 3), jnp.float32)   # in [0, 1]
    ppf = jax.random.normal(ks[2], (N, C_FEAT), jnp.float32)
    pred_conf = jax.random.uniform(ks[3], (N, 1), jnp.float32)   # unused (default cfg)
    batch_idx = jax.random.randint(ks[4], (N,), 0, BATCH, jnp.int32)

    w1 = 0.1 * jax.random.normal(ks[5], (C_IN, H1), jnp.float32)
    b1 = 0.1 * jax.random.normal(ks[6], (H1,), jnp.float32)
    g1 = 1.0 + 0.1 * jax.random.normal(ks[7], (H1,), jnp.float32)
    be1 = 0.1 * jax.random.normal(ks[8], (H1,), jnp.float32)
    w2 = 0.1 * jax.random.normal(ks[9], (H1, F_OUT), jnp.float32)
    b2 = 0.1 * jax.random.normal(ks[10], (F_OUT,), jnp.float32)
    g2 = 1.0 + 0.1 * jax.random.normal(ks[11], (F_OUT,), jnp.float32)
    be2 = 0.1 * jax.random.normal(ks[12], (F_OUT,), jnp.float32)
    params = (w1, b1, g1, be1, w2, b2, g2, be2)

    packed = pack_params(params)          # hoisted: runs once at "module init"
    packed = jax.block_until_ready(packed)

    out = volume_feature_aggregator(xyz, pred_nocs, ppf, pred_conf,
                                    batch_idx, packed)
    out = jax.block_until_ready(out)
    assert out.shape == (BATCH, F_OUT) + GRID_SHAPE

    ref = jax.block_until_ready(
        _reference(xyz, pred_nocs, ppf, batch_idx, params))
    np.testing.assert_allclose(np.asarray(out), np.asarray(ref),
                               rtol=2e-3, atol=2e-3)
    print("KERNEL_OK")
</pallas_src>

<mosaic_0001>
module attributes {stable_mosaic.version = 11 : i64} {
  func.func @_volume_agg_kernel(%arg0: i32, %arg1: memref<128x64xf32, #tpu.memory_space<vmem>>, %arg2: memref<96x32xf32, #tpu.memory_space<vmem>>, %arg3: memref<16x64xf32, #tpu.memory_space<vmem>>, %arg4: memref<4x16x256xf32, #tpu.memory_space<vmem>>) attributes {dimension_semantics = [#tpu.dimension_semantics<arbitrary>], iteration_bounds = array<i64: 1>, scalar_prefetch = 0 : i64, scratch_operands = 0 : i64, tpu.core_type = #tpu.core_type<tc>, window_params = [{pipeline_mode = #tpu.pipeline_mode<synchronous>, transform_indices = @transform_0, window_bounds = array<i64: 128, 64>}, {pipeline_mode = #tpu.pipeline_mode<synchronous>, transform_indices = @transform_1, window_bounds = array<i64: 96, 32>}, {pipeline_mode = #tpu.pipeline_mode<synchronous>, transform_indices = @transform_2, window_bounds = array<i64: 16, 64>}, {pipeline_mode = #tpu.pipeline_mode<synchronous>, transform_indices = @transform_3, window_bounds = array<i64: 4, 16, 256>}]} {
    %c0 = arith.constant 0 : index
    %c0_0 = arith.constant 0 : index
    %0 = vector.load %arg1[%c0, %c0_0] : memref<128x64xf32, #tpu.memory_space<vmem>>, vector<128x64xf32>
    %c6 = arith.constant 6 : index
    %c0_1 = arith.constant 0 : index
    %1 = vector.load %arg3[%c6, %c0_1] : memref<16x64xf32, #tpu.memory_space<vmem>>, vector<1x64xf32>
    %c7 = arith.constant 7 : index
    %c0_2 = arith.constant 0 : index
    %2 = vector.load %arg3[%c7, %c0_2] : memref<16x64xf32, #tpu.memory_space<vmem>>, vector<1x64xf32>
    %c8 = arith.constant 8 : index
    %c0_3 = arith.constant 0 : index
    %3 = vector.load %arg3[%c8, %c0_3] : memref<16x64xf32, #tpu.memory_space<vmem>>, vector<1x64xf32>
    %c9 = arith.constant 9 : index
    %c0_4 = arith.constant 0 : index
    %4 = vector.load %arg3[%c9, %c0_4] : memref<16x64xf32, #tpu.memory_space<vmem>>, vector<1x64xf32>
    %c10 = arith.constant 10 : index
    %c0_5 = arith.constant 0 : index
    %5 = vector.load %arg3[%c10, %c0_5] : memref<16x64xf32, #tpu.memory_space<vmem>>, vector<1x64xf32>
    %6 = vector.broadcast %1 : vector<1x64xf32> to vector<128x64xf32>
    %7 = arith.subf %0, %6 : vector<128x64xf32>
    %8 = vector.broadcast %3 : vector<1x64xf32> to vector<128x64xf32>
    %9 = arith.mulf %7, %8 : vector<128x64xf32>
    %10 = math.roundeven %9 : vector<128x64xf32>
    %cst = arith.constant 0.000000e+00 : f32
    %11 = vector.broadcast %cst : f32 to vector<128x64xf32>
    %12 = arith.maximumf %11, %10 : vector<128x64xf32>
    %13 = vector.broadcast %4 : vector<1x64xf32> to vector<128x64xf32>
    %14 = arith.minimumf %13, %12 : vector<128x64xf32>
    %15 = vector.broadcast %2 : vector<1x64xf32> to vector<128x64xf32>
    %16 = arith.mulf %14, %15 : vector<128x64xf32>
    %17 = vector.broadcast %1 : vector<1x64xf32> to vector<128x64xf32>
    %18 = arith.addf %16, %17 : vector<128x64xf32>
    %19 = arith.subf %0, %18 : vector<128x64xf32>
    %20 = vector.broadcast %5 : vector<1x64xf32> to vector<128x64xf32>
    %21 = arith.mulf %14, %20 : vector<128x64xf32>
    %cst_6 = arith.constant dense<0.000000e+00> : vector<128xf32>
    %22 = vector.multi_reduction <add>, %21, %cst_6 [1] : vector<128x64xf32> to vector<128xf32>
    %23 = vector.shape_cast %22 : vector<128xf32> to vector<128x1xf32>
    %24 = arith.fptosi %23 : vector<128x1xf32> to vector<128x1xi32>
    %c0_7 = arith.constant 0 : index
    %c0_8 = arith.constant 0 : index
    %25 = vector.load %arg2[%c0_7, %c0_8] : memref<96x32xf32, #tpu.memory_space<vmem>>, vector<64x32xf32>
    %cst_9 = arith.constant dense<0.000000e+00> : vector<128x32xf32>
    %26 = tpu.matmul %19, %25, %cst_9 {dimension_numbers = #tpu.dot_dimension_numbers<[1], [0], [0], [1], [0, 0, 1, 1], [], []>} : vector<128x64xf32>, vector<64x32xf32>, vector<128x32xf32> -> vector<128x32xf32>
    %c0_10 = arith.constant 0 : index
    %c0_11 = arith.constant 0 : index
    %27 = vector.load %arg3[%c0_10, %c0_11] : memref<16x64xf32, #tpu.memory_space<vmem>>, vector<1x32xf32>
    %28 = vector.broadcast %27 : vector<1x32xf32> to vector<128x32xf32>
    %29 = arith.addf %26, %28 : vector<128x32xf32>
    %cst_12 = arith.constant 0.000000e+00 : f32
    %30 = vector.broadcast %cst_12 : f32 to vector<128x32xf32>
    %31 = arith.maximumf %29, %30 : vector<128x32xf32>
    %cst_13 = arith.constant dense<0.000000e+00> : vector<32xf32>
    %32 = vector.multi_reduction <add>, %31, %cst_13 [0] : vector<128x32xf32> to vector<32xf32>
    %33 = vector.shape_cast %32 : vector<32xf32> to vector<1x32xf32>
    %cst_14 = arith.constant 1.280000e+02 : f32
    %34 = vector.broadcast %cst_14 : f32 to vector<1x32xf32>
    %35 = arith.divf %33, %34 : vector<1x32xf32>
    %36 = vector.broadcast %35 : vector<1x32xf32> to vector<128x32xf32>
    %37 = arith.subf %31, %36 : vector<128x32xf32>
    %38 = arith.mulf %37, %37 : vector<128x32xf32>
    %cst_15 = arith.constant dense<0.000000e+00> : vector<32xf32>
    %39 = vector.multi_reduction <add>, %38, %cst_15 [0] : vector<128x32xf32> to vector<32xf32>
    %40 = vector.shape_cast %39 : vector<32xf32> to vector<1x32xf32>
    %cst_16 = arith.constant 1.280000e+02 : f32
    %41 = vector.broadcast %cst_16 : f32 to vector<1x32xf32>
    %42 = arith.divf %40, %41 : vector<1x32xf32>
    %cst_17 = arith.constant 9.99999974E-6 : f32
    %43 = vector.broadcast %cst_17 : f32 to vector<1x32xf32>
    %44 = arith.addf %42, %43 : vector<1x32xf32>
    %45 = math.rsqrt %44 : vector<1x32xf32>
    %c1 = arith.constant 1 : index
    %c0_18 = arith.constant 0 : index
    %46 = vector.load %arg3[%c1, %c0_18] : memref<16x64xf32, #tpu.memory_space<vmem>>, vector<1x32xf32>
    %47 = arith.mulf %45, %46 : vector<1x32xf32>
    %48 = vector.broadcast %47 : vector<1x32xf32> to vector<128x32xf32>
    %49 = arith.mulf %37, %48 : vector<128x32xf32>
    %c2 = arith.constant 2 : index
    %c0_19 = arith.constant 0 : index
    %50 = vector.load %arg3[%c2, %c0_19] : memref<16x64xf32, #tpu.memory_space<vmem>>, vector<1x32xf32>
    %51 = vector.broadcast %50 : vector<1x32xf32> to vector<128x32xf32>
    %52 = arith.addf %49, %51 : vector<128x32xf32>
    %c64 = arith.constant 64 : index
    %c0_20 = arith.constant 0 : index
    %53 = vector.load %arg2[%c64, %c0_20] : memref<96x32xf32, #tpu.memory_space<vmem>>, vector<32x32xf32>
    %cst_21 = arith.constant dense<0.000000e+00> : vector<128x32xf32>
    %54 = tpu.matmul %52, %53, %cst_21 {dimension_numbers = #tpu.dot_dimension_numbers<[1], [0], [0], [1], [0, 0, 1, 1], [], []>} : vector<128x32xf32>, vector<32x32xf32>, vector<128x32xf32> -> vector<128x32xf32>
    %c3 = arith.constant 3 : index
    %c0_22 = arith.constant 0 : index
    %55 = vector.load %arg3[%c3, %c0_22] : memref<16x64xf32, #tpu.memory_space<vmem>>, vector<1x32xf32>
    %56 = vector.broadcast %55 : vector<1x32xf32> to vector<128x32xf32>
    %57 = arith.addf %54, %56 : vector<128x32xf32>
    %cst_23 = arith.constant 0.000000e+00 : f32
    %58 = vector.broadcast %cst_23 : f32 to vector<128x32xf32>
    %59 = arith.maximumf %57, %58 : vector<128x32xf32>
    %cst_24 = arith.constant dense<0.000000e+00> : vector<32xf32>
    %60 = vector.multi_reduction <add>, %59, %cst_24 [0] : vector<128x32xf32> to vector<32xf32>
    %61 = vector.shape_cast %60 : vector<32xf32> to vector<1x32xf32>
    %cst_25 = arith.constant 1.280000e+02 : f32
    %62 = vector.broadcast %cst_25 : f32 to vector<1x32xf32>
    %63 = arith.divf %61, %62 : vector<1x32xf32>
    %64 = vector.broadcast %63 : vector<1x32xf32> to vector<128x32xf32>
    %65 = arith.subf %59, %64 : vector<128x32xf32>
    %66 = arith.mulf %65, %65 : vector<128x32xf32>
    %cst_26 = arith.constant dense<0.000000e+00> : vector<32xf32>
    %67 = vector.multi_reduction <add>, %66, %cst_26 [0] : vector<128x32xf32> to vector<32xf32>
    %68 = vector.shape_cast %67 : vector<32xf32> to vector<1x32xf32>
    %cst_27 = arith.constant 1.280000e+02 : f32
    %69 = vector.broadcast %cst_27 : f32 to vector<1x32xf32>
    %70 = arith.divf %68, %69 : vector<1x32xf32>
    %cst_28 = arith.constant 9.99999974E-6 : f32
    %71 = vector.broadcast %cst_28 : f32 to vector<1x32xf32>
    %72 = arith.addf %70, %71 : vector<1x32xf32>
    %73 = math.rsqrt %72 : vector<1x32xf32>
    %c4 = arith.constant 4 : index
    %c0_29 = arith.constant 0 : index
    %74 = vector.load %arg3[%c4, %c0_29] : memref<16x64xf32, #tpu.memory_space<vmem>>, vector<1x32xf32>
    %75 = arith.mulf %73, %74 : vector<1x32xf32>
    %76 = vector.broadcast %75 : vector<1x32xf32> to vector<128x32xf32>
    %77 = arith.mulf %65, %76 : vector<128x32xf32>
    %c5 = arith.constant 5 : index
    %c0_30 = arith.constant 0 : index
    %78 = vector.load %arg3[%c5, %c0_30] : memref<16x64xf32, #tpu.memory_space<vmem>>, vector<1x32xf32>
    %79 = vector.broadcast %78 : vector<1x32xf32> to vector<128x32xf32>
    %80 = arith.addf %77, %79 : vector<128x32xf32>
    %81 = tpu.iota {dimensions = array<i32: 1>} : vector<128x256xi32>
    %c0_i32 = arith.constant 0 : i32
    %c256_i32 = arith.constant 256 : i32
    %82 = arith.muli %c0_i32, %c256_i32 : i32
    %83 = vector.broadcast %82 : i32 to vector<128x1xi32>
    %84 = arith.subi %24, %83 : vector<128x1xi32>
    %85 = vector.broadcast %84 : vector<128x1xi32> to vector<128x256xi32>
    %86 = arith.cmpi eq, %85, %81 : vector<128x256xi32>
    %87 = arith.extui %86 : vector<128x256xi1> to vector<128x256xi32>
    %88 = arith.sitofp %87 : vector<128x256xi32> to vector<128x256xf32>
    %cst_31 = arith.constant dense<0.000000e+00> : vector<32x256xf32>
    %89 = tpu.matmul %80, %88, %cst_31 {dimension_numbers = #tpu.dot_dimension_numbers<[0], [0], [1], [1], [0, 1, 1, 1], [], []>} : vector<128x32xf32>, vector<128x256xf32>, vector<32x256xf32> -> vector<32x256xf32>
    %90 = vector.extract_strided_slice %89 {offsets = [16, 0], sizes = [1, 256], strides = [1, 1]} : vector<32x256xf32> to vector<1x256xf32>
    %cst_32 = arith.constant 1.000000e+00 : f32
    %91 = vector.broadcast %cst_32 : f32 to vector<1x256xf32>
    %92 = arith.maximumf %90, %91 : vector<1x256xf32>
    %93 = tpu.reciprocal %92 {approx = true} : vector<1x256xf32> -> vector<1x256xf32>
    %94 = vector.extract_strided_slice %89 {offsets = [0, 0], sizes = [16, 256], strides = [1, 1]} : vector<32x256xf32> to vector<16x256xf32>
    %95 = vector.broadcast %93 : vector<1x256xf32> to vector<16x256xf32>
    %96 = arith.mulf %94, %95 : vector<16x256xf32>
    %97 = arith.index_cast %c0_i32 : i32 to index
    %c0_33 = arith.constant 0 : index
    %c0_34 = arith.constant 0 : index
    %98 = vector.load %arg4[%97, %c0_33, %c0_34] : memref<4x16x256xf32, #tpu.memory_space<vmem>>, vector<1x16x256xf32>
    %99 = vector.shape_cast %98 : vector<1x16x256xf32> to vector<16x256xf32>
    %100 = vector.shape_cast %96 : vector<16x256xf32> to vector<1x16x256xf32>
    tpu.vector_store %arg4[%97, %c0_33, %c0_34], %100 {strides = array<i32>} : memref<4x16x256xf32, #tpu.memory_space<vmem>>, vector<1x16x256xf32>,
    %c1_i32 = arith.constant 1 : i32
    %c256_i32_35 = arith.constant 256 : i32
    %101 = arith.muli %c1_i32, %c256_i32_35 : i32
    %102 = vector.broadcast %101 : i32 to vector<128x1xi32>
    %103 = arith.subi %24, %102 : vector<128x1xi32>
    %104 = vector.broadcast %103 : vector<128x1xi32> to vector<128x256xi32>
    %105 = arith.cmpi eq, %104, %81 : vector<128x256xi32>
    %106 = arith.extui %105 : vector<128x256xi1> to vector<128x256xi32>
    %107 = arith.sitofp %106 : vector<128x256xi32> to vector<128x256xf32>
    %cst_36 = arith.constant dense<0.000000e+00> : vector<32x256xf32>
    %108 = tpu.matmul %80, %107, %cst_36 {dimension_numbers = #tpu.dot_dimension_numbers<[0], [0], [1], [1], [0, 1, 1, 1], [], []>} : vector<128x32xf32>, vector<128x256xf32>, vector<32x256xf32> -> vector<32x256xf32>
    %109 = vector.extract_strided_slice %108 {offsets = [16, 0], sizes = [1, 256], strides = [1, 1]} : vector<32x256xf32> to vector<1x256xf32>
    %cst_37 = arith.constant 1.000000e+00 : f32
    %110 = vector.broadcast %cst_37 : f32 to vector<1x256xf32>
    %111 = arith.maximumf %109, %110 : vector<1x256xf32>
    %112 = tpu.reciprocal %111 {approx = true} : vector<1x256xf32> -> vector<1x256xf32>
    %113 = vector.extract_strided_slice %108 {offsets = [0, 0], sizes = [16, 256], strides = [1, 1]} : vector<32x256xf32> to vector<16x256xf32>
    %114 = vector.broadcast %112 : vector<1x256xf32> to vector<16x256xf32>
    %115 = arith.mulf %113, %114 : vector<16x256xf32>
    %116 = arith.index_cast %c1_i32 : i32 to index
    %c0_38 = arith.constant 0 : index
    %c0_39 = arith.constant 0 : index
    %117 = vector.load %arg4[%116, %c0_38, %c0_39] : memref<4x16x256xf32, #tpu.memory_space<vmem>>, vector<1x16x256xf32>
    %118 = vector.shape_cast %117 : vector<1x16x256xf32> to vector<16x256xf32>
    %119 = vector.shape_cast %115 : vector<16x256xf32> to vector<1x16x256xf32>
    tpu.vector_store %arg4[%116, %c0_38, %c0_39], %119 {strides = array<i32>} : memref<4x16x256xf32, #tpu.memory_space<vmem>>, vector<1x16x256xf32>,
    %c2_i32 = arith.constant 2 : i32
    %c256_i32_40 = arith.constant 256 : i32
    %120 = arith.muli %c2_i32, %c256_i32_40 : i32
    %121 = vector.broadcast %120 : i32 to vector<128x1xi32>
    %122 = arith.subi %24, %121 : vector<128x1xi32>
    %123 = vector.broadcast %122 : vector<128x1xi32> to vector<128x256xi32>
    %124 = arith.cmpi eq, %123, %81 : vector<128x256xi32>
    %125 = arith.extui %124 : vector<128x256xi1> to vector<128x256xi32>
    %126 = arith.sitofp %125 : vector<128x256xi32> to vector<128x256xf32>
    %cst_41 = arith.constant dense<0.000000e+00> : vector<32x256xf32>
    %127 = tpu.matmul %80, %126, %cst_41 {dimension_numbers = #tpu.dot_dimension_numbers<[0], [0], [1], [1], [0, 1, 1, 1], [], []>} : vector<128x32xf32>, vector<128x256xf32>, vector<32x256xf32> -> vector<32x256xf32>
    %128 = vector.extract_strided_slice %127 {offsets = [16, 0], sizes = [1, 256], strides = [1, 1]} : vector<32x256xf32> to vector<1x256xf32>
    %cst_42 = arith.constant 1.000000e+00 : f32
    %129 = vector.broadcast %cst_42 : f32 to vector<1x256xf32>
    %130 = arith.maximumf %128, %129 : vector<1x256xf32>
    %131 = tpu.reciprocal %130 {approx = true} : vector<1x256xf32> -> vector<1x256xf32>
    %132 = vector.extract_strided_slice %127 {offsets = [0, 0], sizes = [16, 256], strides = [1, 1]} : vector<32x256xf32> to vector<16x256xf32>
    %133 = vector.broadcast %131 : vector<1x256xf32> to vector<16x256xf32>
    %134 = arith.mulf %132, %133 : vector<16x256xf32>
    %135 = arith.index_cast %c2_i32 : i32 to index
    %c0_43 = arith.constant 0 : index
    %c0_44 = arith.constant 0 : index
    %136 = vector.load %arg4[%135, %c0_43, %c0_44] : memref<4x16x256xf32, #tpu.memory_space<vmem>>, vector<1x16x256xf32>
    %137 = vector.shape_cast %136 : vector<1x16x256xf32> to vector<16x256xf32>
    %138 = vector.shape_cast %134 : vector<16x256xf32> to vector<1x16x256xf32>
    tpu.vector_store %arg4[%135, %c0_43, %c0_44], %138 {strides = array<i32>} : memref<4x16x256xf32, #tpu.memory_space<vmem>>, vector<1x16x256xf32>,
    %c3_i32 = arith.constant 3 : i32
    %c256_i32_45 = arith.constant 256 : i32
    %139 = arith.muli %c3_i32, %c256_i32_45 : i32
    %140 = vector.broadcast %139 : i32 to vector<128x1xi32>
    %141 = arith.subi %24, %140 : vector<128x1xi32>
    %142 = vector.broadcast %141 : vector<128x1xi32> to vector<128x256xi32>
    %143 = arith.cmpi eq, %142, %81 : vector<128x256xi32>
    %144 = arith.extui %143 : vector<128x256xi1> to vector<128x256xi32>
    %145 = arith.sitofp %144 : vector<128x256xi32> to vector<128x256xf32>
    %cst_46 = arith.constant dense<0.000000e+00> : vector<32x256xf32>
    %146 = tpu.matmul %80, %145, %cst_46 {dimension_numbers = #tpu.dot_dimension_numbers<[0], [0], [1], [1], [0, 1, 1, 1], [], []>} : vector<128x32xf32>, vector<128x256xf32>, vector<32x256xf32> -> vector<32x256xf32>
    %147 = vector.extract_strided_slice %146 {offsets = [16, 0], sizes = [1, 256], strides = [1, 1]} : vector<32x256xf32> to vector<1x256xf32>
    %cst_47 = arith.constant 1.000000e+00 : f32
    %148 = vector.broadcast %cst_47 : f32 to vector<1x256xf32>
    %149 = arith.maximumf %147, %148 : vector<1x256xf32>
    %150 = tpu.reciprocal %149 {approx = true} : vector<1x256xf32> -> vector<1x256xf32>
    %151 = vector.extract_strided_slice %146 {offsets = [0, 0], sizes = [16, 256], strides = [1, 1]} : vector<32x256xf32> to vector<16x256xf32>
    %152 = vector.broadcast %150 : vector<1x256xf32> to vector<16x256xf32>
    %153 = arith.mulf %151, %152 : vector<16x256xf32>
    %154 = arith.index_cast %c3_i32 : i32 to index
    %c0_48 = arith.constant 0 : index
    %c0_49 = arith.constant 0 : index
    %155 = vector.load %arg4[%154, %c0_48, %c0_49] : memref<4x16x256xf32, #tpu.memory_space<vmem>>, vector<1x16x256xf32>
    %156 = vector.shape_cast %155 : vector<1x16x256xf32> to vector<16x256xf32>
    %157 = vector.shape_cast %153 : vector<16x256xf32> to vector<1x16x256xf32>
    tpu.vector_store %arg4[%154, %c0_48, %c0_49], %157 {strides = array<i32>} : memref<4x16x256xf32, #tpu.memory_space<vmem>>, vector<1x16x256xf32>,
    %c4_i32 = arith.constant 4 : i32
    return
  }
  func.func @transform_0(%arg0: i32) -> (i32, i32) {
    %c0_i32 = arith.constant 0 : i32
    %c0_i32_0 = arith.constant 0 : i32
    %c0_i32_1 = arith.constant 0 : i32
    return %c0_i32, %c0_i32_0 : i32, i32
  }
  func.func @transform_1(%arg0: i32) -> (i32, i32) {
    %c0_i32 = arith.constant 0 : i32
    %c0_i32_0 = arith.constant 0 : i32
    %c0_i32_1 = arith.constant 0 : i32
    return %c0_i32, %c0_i32_0 : i32, i32
  }
  func.func @transform_2(%arg0: i32) -> (i32, i32) {
    %c0_i32 = arith.constant 0 : i32
    %c0_i32_0 = arith.constant 0 : i32
    %c0_i32_1 = arith.constant 0 : i32
    return %c0_i32, %c0_i32_0 : i32, i32
  }
  func.func @transform_3(%arg0: i32) -> (i32, i32, i32) {
    %c0_i32 = arith.constant 0 : i32
    %c0_i32_0 = arith.constant 0 : i32
    %c0_i32_1 = arith.constant 0 : i32
    %c0_i32_2 = arith.constant 0 : i32
    return %c0_i32, %c0_i32_0, %c0_i32_1 : i32, i32, i32
  }
}

</mosaic_0001>

<bundles_post_ra>
// kernel: tpu_custom_call.1
= control target key start
LH: loop header
LB: loop body
LE: loop exit
PB: predicated region body
PF: predicated region fallthrough
CT: control target
= control target key end

     0   :  { %s4028_s0 = inlined_call_operand.vmem [shape: f32[128,64], index: 0, kind: input, shape index: {}]   ;;  %s4029_s1 = inlined_call_operand.vmem [shape: f32[96,32], index: 1, kind: input, shape index: {}]   ;;  %s4030_s2 = inlined_call_operand.vmem [shape: f32[16,64], index: 2, kind: input, shape index: {}]   ;;  %s4031_s3 = inlined_call_operand.hbm [shape: f32[4,16,256], index: 3, kind: output, shape index: {}]  }
   0x1   :  { %v272_v0 = vld [vmem:[%s4029_s1 + $0x38] sm:$0xff]  ;;  %v271_v1 = vld [vmem:[%s4029_s1 + $0x30] sm:$0xff]  ;;  %v270_v2 = vld [vmem:[%s4029_s1 + $0x28] sm:$0xff] }
   0x2   :  { %2316 = vmatprep.subr.mxu0 %v272_v0  ;;  %v2632_v3 = vld [vmem:[%s4028_s0] sm:$0xff]  ;;  %v2642_v5 = vld [vmem:[%s4030_s2 + $0x8] ss:$0 sm:$0xff]  ;;  %v2657_v9 = vld [vmem:[%s4028_s0 + $0x10] sm:$0xff] }
   0x3   :  { %2317 = vmatpush3.msra.mxu0 %v272_v0  ;;  %v2637_v4 = vld [vmem:[%s4030_s2 + $0x6] ss:$0 sm:$0xff]  ;;  %v2652_v8 = vld [vmem:[%s4028_s0 + $0x8] sm:$0xff]  ;;  %v2666_v12 = vld [vmem:[%s4028_s0 + $0x18] sm:$0xff] }
   0x4   :  { %2318 = vmatprep.subr.mxu0 %v271_v1  ;;  %v269_v6 = vld [vmem:[%s4029_s1 + $0x20] sm:$0xff]  ;;  %v40_v7 = vsub.f32 %v2632_v3, %v2637_v4  ;;  %v41_v10 = vsub.f32 %v2652_v8, %v2637_v4  ;;  %v42_v11 = vsub.f32 %v2657_v9, %v2637_v4  ;;  %v2676_v14 = vld [vmem:[%s4028_s0 + $0x28] sm:$0xff]  ;;  %v268_v15 = vld [vmem:[%s4029_s1 + $0x18] sm:$0xff]  ;;  %v43_v17 = vsub.f32 %v2666_v12, %v2637_v4 }
   0x5   :  { %2319 = vmatpush3.msra.mxu0 %v271_v1  ;;  %v2671_v13 = vld [vmem:[%s4028_s0 + $0x20] sm:$0xff]  ;;  %v45_v19 = vsub.f32 %v2676_v14, %v2637_v4  ;;  %v2691_v20 = vld [vmem:[%s4028_s0 + $0x30] sm:$0xff]  ;;  %v2696_v21 = vld [vmem:[%s4028_s0 + $0x38] sm:$0xff] }
   0x6   :  { %2320 = vmatprep.subr.mxu0 %v270_v2  ;;  %v60_v16 = vmul.f32 %v2642_v5, %v40_v7  ;;  %v44_v18 = vsub.f32 %v2671_v13, %v2637_v4  ;;  %v61_v22 = vmul.f32 %v2642_v5, %v41_v10  ;;  %v2700_v23 = vmul.f32 %v2642_v5, %v42_v11  ;;  %v267_v26 = vld [vmem:[%s4029_s1 + $0x10] sm:$0xff]  ;;  %v266_v35 = vld [vmem:[%s4029_s1 + $0x8] sm:$0xff] }
   0x7   :  { %2321 = vmatpush3.msra.mxu0 %v270_v2  ;;  %v46_v24 = vsub.f32 %v2691_v20, %v2637_v4  ;;  %v47_v25 = vsub.f32 %v2696_v21, %v2637_v4  ;;  %v2710_v30 = vmul.f32 %v2642_v5, %v43_v17 }
   0x8   :  { %2322 = vmatprep.subr.mxu0 %v269_v6  ;;  %v2388_v27 = vand.u32 2147483647, %v60_v16  ;;  %v2390_v28 = vcvt.f32.s32 %v60_v16  ;;  %v2393_v29 = vand.u32 2147483648, %v60_v16  ;;  %v2396_v31 = vand.u32 2147483647, %v61_v22 }
   0x9   :  { %2323 = vmatpush3.msra.mxu0 %v269_v6  ;;  %v2398_v32 = vcvt.f32.s32 %v61_v22  ;;  %v2401_v33 = vand.u32 2147483648, %v61_v22  ;;  %v2404_v34 = vand.u32 2147483647, %v2700_v23  ;;  %v2406_v38 = vcvt.f32.s32 %v2700_v23 }
   0xa   :  { %2324 = vmatprep.subr.mxu0 %v268_v15  ;;  %vm2716_vm0 = vcmp.lt.f32.partialorder %v2388_v27, 8388608.0  ;;  %v2391_v37 = vcvt.s32.f32 %v2390_v28  ;;  %v2409_v39 = vand.u32 2147483648, %v2700_v23 }
   0xb   :  { %2325 = vmatpush3.msra.mxu0 %v268_v15 }
   0xc   :  { %8 = vsyncpa [#allocation3], 0  ;;  %2326 = vmatprep.subr.mxu0 %v267_v26  ;;  %vm2722_vm1 = vcmp.lt.f32.partialorder %v2396_v31, 8388608.0  ;;  %v2399_v41 = vcvt.s32.f32 %v2398_v32  ;;  %vm2726_vm2 = vcmp.lt.f32.partialorder %v2404_v34, 8388608.0  ;;  %v2412_v43 = vand.u32 2147483647, %v2710_v30 }
   0xd   :  { %2327 = vmatpush3.msra.mxu0 %v267_v26  ;;  %v265_v44 = vld [vmem:[%s4029_s1] sm:$0xff]  ;;  %v2392_v45 = vand.u32 2147483647, %v2391_v37  ;;  %v2407_v46 = vcvt.s32.f32 %v2406_v38  ;;  %v2414_v47 = vcvt.f32.s32 %v2710_v30  ;;  %v2417_v48 = vand.u32 2147483648, %v2710_v30  ;;  %v2750_v61 = vld [vmem:[%s4030_s2 + $0x9] ss:$0 sm:$0xff] }
   0xe   :  { %2328 = vmatprep.subr.mxu0 %v266_v35  ;;  %v2400_v49 = vand.u32 2147483647, %v2399_v41  ;;  %vm2736_vm3 = vcmp.lt.f32.partialorder %v2412_v43, 8388608.0  ;;  %v64_v51 = vmul.f32 %v2642_v5, %v44_v18  ;;  %v2742_v52 = vmul.f32 %v2642_v5, %v45_v19  ;;  %v2764_v11 = vld [vmem:[%s4030_s2 + $0x7] ss:$0 sm:$0xff]  ;;  %v2860_v18 = vld [vmem:[%s4028_s0 + $0x58] sm:$0xff] }
   0xf   :  { %2329 = vmatpush3.msra.mxu0 %v266_v35  ;;  %v2394_v53 = vor.u32 %v2393_v29, %v2392_v45  ;;  %v2408_v54 = vand.u32 2147483647, %v2407_v46  ;;  %v2415_v55 = vcvt.s32.f32 %v2414_v47  ;;  %v2745_v56 = vmul.f32 %v2642_v5, %v46_v24  ;;  %v2809_v46 = vld [vmem:[%s4028_s0 + $0x40] sm:$0xff] }
  0x10   :  { %2330 = vmatprep.subr.mxu0 %v265_v44  ;;  %v2402_v57 = vor.u32 %v2401_v33, %v2400_v49  ;;  %v2420_v58 = vand.u32 2147483647, %v64_v51  ;;  %v2422_v59 = vcvt.f32.s32 %v64_v51  ;;  %v2425_v60 = vand.u32 2147483648, %v64_v51 }
  0x11   :  { %2331 = vmatpush3.msra.mxu0 %v265_v44  ;;  %v2395_v62 = vsel %vm2716_vm0, %v2394_v53, %v60_v16  ;;  %vm200_vm4 = vcmask 523264   ;;  %v2410_v63 = vor.u32 %v2409_v39, %v2408_v54  ;;  %v2416_v0 = vand.u32 2147483647, %v2415_v55 }
  0x12   :  { %v2428_v1 = vand.u32 2147483647, %v2742_v52  ;;  %v92_v2 = vmax.f32 %v2395_v62, 0.0  ;;  %v2403_v6 = vsel %vm2722_vm1, %v2402_v57, %v61_v22  ;;  %vm2757_vm5 = vcmp.lt.f32.partialorder %v2420_v58, 8388608.0 }
  0x13   :  { %v2423_v10 = vcvt.s32.f32 %v2422_v59  ;;  %v93_v15 = vmax.f32 %v2403_v6, 0.0  ;;  %v2411_v16 = vsel %vm2726_vm2, %v2410_v63, %v2700_v23  ;;  %v2418_v17 = vor.u32 %v2417_v48, %v2416_v0 }
  0x14   :  { %vm2769_vm6 = vcmp.lt.f32.partialorder %v2428_v1, 8388608.0  ;;  %v2774_v19 = vmin.f32 %v2750_v61, %v92_v2  ;;  %v94_v22 = vmax.f32 %v2411_v16, 0.0  ;;  %v2430_v26 = vcvt.f32.s32 %v2742_v52 }
  0x15   :  { %v2424_v24 = vand.u32 2147483647, %v2423_v10  ;;  %v2778_v27 = vmin.f32 %v2750_v61, %v93_v15  ;;  %v2419_v28 = vsel %vm2736_vm3, %v2418_v17, %v2710_v30  ;;  %v2433_v23 = vand.u32 2147483648, %v2742_v52 }
  0x16   :  { %v2436_v29 = vand.u32 2147483647, %v2745_v56  ;;  %v132_v31 = vmul.f32 %v2764_v11, %v2774_v19  ;;  %v2788_v32 = vmin.f32 %v2750_v61, %v94_v22  ;;  %v95_v33 = vmax.f32 %v2419_v28, 0.0 }
  0x17   :  { %v2426_v34 = vor.u32 %v2425_v60, %v2424_v24  ;;  %v133_v35 = vmul.f32 %v2764_v11, %v2778_v27  ;;  %v2431_v36 = vcvt.s32.f32 %v2430_v26  ;;  %v2438_v30 = vcvt.f32.s32 %v2745_v56 }
  0x18   :  { %vm2792_vm7 = vcmp.lt.f32.partialorder %v2436_v29, 8388608.0  ;;  %v148_v38 = vadd.f32 %v2637_v4, %v132_v31  ;;  %v134_v39 = vmul.f32 %v2764_v11, %v2788_v32  ;;  %v2801_v40 = vmin.f32 %v2750_v61, %v95_v33 }
  0x19   :  { %v2427_v41 = vsel %vm2757_vm5, %v2426_v34, %v64_v51  ;;  %v149_v42 = vadd.f32 %v2637_v4, %v133_v35  ;;  %v2432_v44 = vand.u32 2147483647, %v2431_v36  ;;  %v2439_v45 = vcvt.s32.f32 %v2438_v30  ;;  %v2819_v51 = vld [vmem:[%s4028_s0 + $0x48] sm:$0xff] }
  0x1a   :  { %v96_v43 = vmax.f32 %v2427_v41, 0.0  ;;  %v164_v47 = vsub.f32 %v2632_v3, %v148_v38  ;;  %v150_v48 = vadd.f32 %v2637_v4, %v134_v39  ;;  %v135_v49 = vmul.f32 %v2764_v11, %v2801_v40 }
  0x1b   :  { %v2441_v50 = vand.u32 2147483648, %v2745_v56  ;;  %v165_v53 = vsub.f32 %v2652_v8, %v149_v42  ;;  %v2434_v55 = vor.u32 %v2433_v23, %v2432_v44  ;;  %v2440_v57 = vand.u32 2147483647, %v2439_v45 }
  0x1c   :  { %v2823_v54 = vmin.f32 %v2750_v61, %v96_v43  ;;  %2332 = vmatprep.mubr.msk.f32.mxu0 %vm200_vm4, %v164_v47  ;;  %v166_v3 = vsub.f32 %v2657_v9, %v150_v48  ;;  %v151_v58 = vadd.f32 %v2637_v4, %v135_v49  ;;  %v67_v59 = vmul.f32 %v2642_v5, %v47_v25 }
  0x1d   :  { %v48_v60 = vsub.f32 %v2809_v46, %v2637_v4  ;;  %2333 = vmatmul.mubr.msk.f32.vlgmr.msra.gmra.mxu0 %vm200_vm4, %v165_v53  ;;  %v2435_v62 = vsel %vm2769_vm6, %v2434_v55, %v2742_v52  ;;  %v2442_v9 = vor.u32 %v2441_v50, %v2440_v57  ;;  %v49_v63 = vsub.f32 %v2819_v51, %v2637_v4 }
  0x1e   :  { %v136_v8 = vmul.f32 %v2764_v11, %v2823_v54  ;;  %2335 = vmatprep.mubr.msk.f32.mxu0 %vm200_vm4, %v166_v3  ;;  %v167_v25 = vsub.f32 %v2666_v12, %v151_v58  ;;  %v97_v0 = vmax.f32 %v2435_v62, 0.0  ;;  %v2444_v1 = vand.u32 2147483647, %v67_v59  ;;  %v2855_v12 = vld [vmem:[%s4028_s0 + $0x50] sm:$0xff] }
  0x1f   :  { %v2446_v2 = vcvt.f32.s32 %v67_v59  ;;  %v2443_v7 = vsel %vm2792_vm7, %v2442_v9, %v2745_v56  ;;  %v68_v10 = vmul.f32 %v2642_v5, %v48_v60  ;;  %v2449_v17 = vand.u32 2147483648, %v67_v59 }
  0x20   :  { %v152_v6 = vadd.f32 %v2637_v4, %v136_v8  ;;  %v2850_v52 = vmin.f32 %v2750_v61, %v97_v0  ;;  %v98_v15 = vmax.f32 %v2443_v7, 0.0  ;;  %vm2864_vm8 = vcmp.lt.f32.partialorder %v2444_v1, 8388608.0  ;;  %v2916_v1 = vld [vmem:[%s4028_s0 + $0x68] sm:$0xff] }
  0x21   :  { %v2447_v16 = vcvt.s32.f32 %v2446_v2  ;;  %2336 = vmatmul.mubr.msk.f32.gmra.mxu0 %vm200_vm4, %v167_v25  ;;  %v2452_v24 = vand.u32 2147483647, %v68_v10  ;;  %v2454_v26 = vcvt.f32.s32 %v68_v10  ;;  %v69_v31 = vmul.f32 %v2642_v5, %v49_v63 }
  0x22   :  { %v168_v56 = vsub.f32 %v2671_v13, %v152_v6  ;;  %v137_v28 = vmul.f32 %v2764_v11, %v2850_v52  ;;  %v2871_v23 = vmin.f32 %v2750_v61, %v98_v15  ;;  %v2457_v34 = vand.u32 2147483648, %v68_v10 }
  0x23   :  { %v2448_v29 = vand.u32 2147483647, %v2447_v16  ;;  %v2455_v33 = vcvt.s32.f32 %v2454_v26  ;;  %v50_v13 = vsub.f32 %v2855_v12, %v2637_v4  ;;  %v51_v35 = vsub.f32 %v2860_v18, %v2637_v4 }
  0x24   :  { %2338 = vmatprep.mubr.msk.f32.mxu0 %vm200_vm4, %v168_v56  ;;  %v153_v36 = vadd.f32 %v2637_v4, %v137_v28  ;;  %v138_v37 = vmul.f32 %v2764_v11, %v2871_v23  ;;  %v2460_v38 = vand.u32 2147483647, %v69_v31  ;;  %vm2882_vm9 = vcmp.lt.f32.partialorder %v2452_v24, 8388608.0 }
  0x25   :  { %v2450_v30 = vor.u32 %v2449_v17, %v2448_v29  ;;  %v2456_v41 = vand.u32 2147483647, %v2455_v33  ;;  %v2462_v42 = vcvt.f32.s32 %v69_v31  ;;  %v70_v43 = vmul.f32 %v2642_v5, %v50_v13 }
  0x26   :  { %v169_v44 = vsub.f32 %v2676_v14, %v153_v36  ;;  %v154_v45 = vadd.f32 %v2637_v4, %v138_v37  ;;  %v2465_v48 = vand.u32 2147483648, %v69_v31  ;;  %vm2893_vm10 = vcmp.lt.f32.partialorder %v2460_v38, 8388608.0 }
  0x27   :  { %v2451_v47 = vsel %vm2864_vm8, %v2450_v30, %v67_v59  ;;  %v2458_v50 = vor.u32 %v2457_v34, %v2456_v41  ;;  %v2463_v53 = vcvt.s32.f32 %v2462_v42  ;;  %v2468_v55 = vand.u32 2147483647, %v70_v43  ;;  %v2901_v59 = vld [vmem:[%s4028_s0 + $0x60] sm:$0xff] }
  0x28   :  { %v99_v49 = vmax.f32 %v2451_v47, 0.0  ;;  %2339 = vmatmul.mubr.msk.f32.gmra.mxu0 %vm200_vm4, %v169_v44  ;;  %v170_v57 = vsub.f32 %v2691_v20, %v154_v45  ;;  %v2470_v58 = vcvt.f32.s32 %v70_v43  ;;  %v71_v14 = vmul.f32 %v2642_v5, %v51_v35 }
  0x29   :  { %v2459_v8 = vsel %vm2882_vm9, %v2458_v50, %v68_v10  ;;  %v2464_v62 = vand.u32 2147483647, %v2463_v53  ;;  %v2473_v20 = vand.u32 2147483648, %v70_v43  ;;  %vm2909_vm11 = vcmp.lt.f32.partialorder %v2468_v55, 8388608.0 }
  0x2a   :  { %v2904_v60 = vmin.f32 %v2750_v61, %v99_v49  ;;  %2341 = vmatprep.mubr.msk.f32.mxu0 %vm200_vm4, %v170_v57  ;;  %v100_v9 = vmax.f32 %v2459_v8, 0.0  ;;  %v2471_v25 = vcvt.s32.f32 %v2470_v58  ;;  %v2478_v0 = vcvt.f32.s32 %v71_v14 }
  0x2b   :  { %v2466_v6 = vor.u32 %v2465_v48, %v2464_v62  ;;  %v2476_v7 = vand.u32 2147483647, %v71_v14  ;;  %v52_v10 = vsub.f32 %v2901_v59, %v2637_v4  ;;  %v2481_v56 = vand.u32 2147483648, %v71_v14 }
  0x2c   :  { %v139_v2 = vmul.f32 %v2764_v11, %v2904_v60  ;;  %v2923_v15 = vmin.f32 %v2750_v61, %v100_v9  ;;  %v2472_v16 = vand.u32 2147483647, %v2471_v25  ;;  %v2479_v17 = vcvt.s32.f32 %v2478_v0 }
  0x2d   :  { %v2467_v24 = vsel %vm2893_vm10, %v2466_v6, %v69_v31  ;;  %v72_v26 = vmul.f32 %v2642_v5, %v52_v10  ;;  %v53_v28 = vsub.f32 %v2916_v1, %v2637_v4  ;;  %vm2934_vm12 = vcmp.lt.f32.partialorder %v2476_v7, 8388608.0  ;;  %v2941_v31 = vld [vmem:[%s4028_s0 + $0x70] sm:$0xff]  ;;  %v30_v6 = vld [vmem:[%s4028_s0 + $0x78] sm:$0xff] }
  0x2e   :  { %v155_v22 = vadd.f32 %v2637_v4, %v139_v2  ;;  %v140_v29 = vmul.f32 %v2764_v11, %v2923_v15  ;;  %v101_v33 = vmax.f32 %v2467_v24, 0.0  ;;  %v2474_v34 = vor.u32 %v2473_v20, %v2472_v16 }
  0x2f   :  { %v2480_v13 = vand.u32 2147483647, %v2479_v17  ;;  %v2484_v37 = vand.u32 2147483647, %v72_v26  ;;  %v2486_v30 = vcvt.f32.s32 %v72_v26  ;;  %v2489_v45 = vand.u32 2147483648, %v72_v26 }
  0x30   :  { %v171_v35 = vsub.f32 %v2696_v21, %v155_v22  ;;  %v156_v38 = vadd.f32 %v2637_v4, %v140_v29  ;;  %v2945_v39 = vmin.f32 %v2750_v61, %v101_v33  ;;  %v2475_v41 = vsel %vm2909_vm11, %v2474_v34, %v70_v43 }
  0x31   :  { %v2482_v21 = vor.u32 %v2481_v56, %v2480_v13  ;;  %v102_v42 = vmax.f32 %v2475_v41, 0.0  ;;  %v2487_v44 = vcvt.s32.f32 %v2486_v30  ;;  %v73_v47 = vmul.f32 %v2642_v5, %v53_v28 }
  0x32   :  { %2342 = vmatmul.mubr.msk.f32.gmra.mxu0 %vm200_vm4, %v171_v35  ;;  %v172_v48 = vsub.f32 %v2809_v46, %v156_v38  ;;  %v141_v49 = vmul.f32 %v2764_v11, %v2945_v39  ;;  %v54_v53 = vsub.f32 %v2941_v31, %v2637_v4  ;;  %vm2963_vm13 = vcmp.lt.f32.partialorder %v2484_v37, 8388608.0 }
  0x33   :  { %v2483_v50 = vsel %vm2934_vm12, %v2482_v21, %v71_v14  ;;  %v2959_v43 = vmin.f32 %v2750_v61, %v102_v42  ;;  %v2488_v57 = vand.u32 2147483647, %v2487_v44  ;;  %v2494_v58 = vcvt.f32.s32 %v73_v47 }
  0x34   :  { %v103_v55 = vmax.f32 %v2483_v50, 0.0  ;;  %2344 = vmatprep.mubr.msk.f32.mxu0 %vm200_vm4, %v172_v48  ;;  %v157_v3 = vadd.f32 %v2637_v4, %v141_v49  ;;  %v74_v8 = vmul.f32 %v2642_v5, %v54_v53  ;;  %v2492_v9 = vand.u32 2147483647, %v73_v47 }
  0x35   :  { %v142_v14 = vmul.f32 %v2764_v11, %v2959_v43  ;;  %v2490_v20 = vor.u32 %v2489_v45, %v2488_v57  ;;  %v2495_v25 = vcvt.s32.f32 %v2494_v58  ;;  %v2497_v0 = vand.u32 2147483648, %v73_v47 }
  0x36   :  { %v2971_v62 = vmin.f32 %v2750_v61, %v103_v55  ;;  %v173_v63 = vsub.f32 %v2819_v51, %v157_v3  ;;  %v2502_v2 = vcvt.f32.s32 %v74_v8  ;;  %v2500_v17 = vand.u32 2147483647, %v74_v8 }
  0x37   :  { %v158_v7 = vadd.f32 %v2637_v4, %v142_v14  ;;  %v2491_v16 = vsel %vm2963_vm13, %v2490_v20, %v72_v26  ;;  %v2496_v51 = vand.u32 2147483647, %v2495_v25  ;;  %v2505_v24 = vand.u32 2147483648, %v74_v8 }
  0x38   :  { %v143_v10 = vmul.f32 %v2764_v11, %v2971_v62  ;;  %2345 = vmatmul.mubr.msk.f32.gmra.mxu0 %vm200_vm4, %v173_v63  ;;  %v104_v56 = vmax.f32 %v2491_v16, 0.0  ;;  %v2503_v22 = vcvt.s32.f32 %v2502_v2  ;;  %vm2493_vm14 = vcmp.lt.f32.partialorder %v2492_v9, 8388608.0 }
  0x39   :  { %v174_v28 = vsub.f32 %v2855_v12, %v158_v7  ;;  %v55_v33 = vsub.f32 %v30_v6, %v2637_v4  ;;  %v2498_v13 = vor.u32 %v2497_v0, %v2496_v51  ;;  %vm2501_vm15 = vcmp.lt.f32.partialorder %v2500_v17, 8388608.0 }
  0x3a   :  { %v159_v29 = vadd.f32 %v2637_v4, %v143_v10  ;;  %v2987_v34 = vmin.f32 %v2750_v61, %v104_v56  ;;  %v2504_v35 = vand.u32 2147483647, %v2503_v22  ;;  %vm487_vm1 = vcmask 261120  }
  0x3b   :  { %2347 = vmatprep.mubr.msk.f32.mxu0 %vm200_vm4, %v174_v28  ;;  %v75_v36 = vmul.f32 %v2642_v5, %v55_v33  ;;  %v2499_v37 = vsel %vm2493_vm14, %v2498_v13, %v73_v47 }
  0x3c   :  { %v175_v26 = vsub.f32 %v2860_v18, %v159_v29  ;;  %v144_v12 = vmul.f32 %v2764_v11, %v2987_v34  ;;  %v2506_v30 = vor.u32 %v2505_v24, %v2504_v35  ;;  %v105_v38 = vmax.f32 %v2499_v37, 0.0 }
  0x3d   :  { %v2510_v41 = vcvt.f32.s32 %v75_v36  ;;  %v2508_v44 = vand.u32 2147483647, %v75_v36  ;;  %v2513_v49 = vand.u32 2147483648, %v75_v36 }
  0x3e   :  { %2348 = vmatmul.mubr.msk.f32.gmra.mxu0 %vm200_vm4, %v175_v26  ;;  %v160_v21 = vadd.f32 %v2637_v4, %v144_v12  ;;  %v2507_v42 = vsel %vm2501_vm15, %v2506_v30, %v74_v8  ;;  %v2997_v45 = vmin.f32 %v2750_v61, %v105_v38 }
  0x3f   :  { %v106_v18 = vmax.f32 %v2507_v42, 0.0  ;;  %v2511_v48 = vcvt.s32.f32 %v2510_v41  ;;  %vm2509_vm0 = vcmp.lt.f32.partialorder %v2508_v44, 8388608.0 }
  0x40   :  { %v176_v5 = vsub.f32 %v2901_v59, %v160_v21  ;;  %v145_v47 = vmul.f32 %v2764_v11, %v2997_v45 }
  0x41   :  { %v3003_v50 = vmin.f32 %v2750_v61, %v106_v18  ;;  %v2512_v53 = vand.u32 2147483647, %v2511_v48  ;;  %v645_v18 = vld [vmem:[%s4029_s1 + $0x58] sm:$0xff] }
  0x42   :  { %2350 = vmatprep.mubr.msk.f32.mxu0 %vm200_vm4, %v176_v5  ;;  %v161_v55 = vadd.f32 %v2637_v4, %v145_v47  ;;  %2356 = vmatprep.subr.mxu1 %v645_v18  ;;  %v644_v47 = vld [vmem:[%s4029_s1 + $0x50] sm:$0xff] }
  0x43   :  { %v146_v57 = vmul.f32 %v2764_v11, %v3003_v50  ;;  %v2514_v3 = vor.u32 %v2513_v49, %v2512_v53  ;;  %2357 = vmatpush3.msra.mxu1 %v645_v18  ;;  %v643_v53 = vld [vmem:[%s4029_s1 + $0x48] sm:$0xff] }
  0x44   :  { %v177_v46 = vsub.f32 %v2916_v1, %v161_v55  ;;  %v3024_v1 = vld [vmem:[%s4030_s2] ss:$0 sm:$0xff]  ;;  %2358 = vmatprep.subr.mxu1 %v644_v47 }
  0x45   :  { %v162_v59 = vadd.f32 %v2637_v4, %v146_v57  ;;  %v2515_v58 = vsel %vm2509_vm0, %v2514_v3, %v75_v36  ;;  %2359 = vmatpush3.msra.mxu1 %v644_v47  ;;  %v642_v3 = vld [vmem:[%s4029_s1 + $0x40] sm:$0xff] }
  0x46   :  { %v107_v8 = vmax.f32 %v2515_v58, 0.0  ;;  %2351 = vmatmul.mubr.msk.f32.gmra.mxu0 %vm200_vm4, %v177_v46  ;;  %2360 = vmatprep.subr.mxu1 %v643_v53 }
  0x47   :  { %v178_v14 = vsub.f32 %v2941_v31, %v162_v59  ;;  %2361 = vmatpush3.msra.mxu1 %v643_v53 }
  0x48   :  { %v3014_v20 = vmin.f32 %v2750_v61, %v107_v8  ;;  %2362 = vmatprep.subr.mxu1 %v642_v3 }
  0x49   :  { %2353 = vmatprep.mubr.msk.f32.mxu0 %vm200_vm4, %v178_v14  ;;  %2363 = vmatpush3.msra.mxu1 %v642_v3 }
  0x4a   :  { %v147_v9 = vmul.f32 %v2764_v11, %v3014_v20 }
  0x4c   :  { %v163_v63 = vadd.f32 %v2637_v4, %v147_v9 }
  0x4e   :  { %v179_v25 = vsub.f32 %v30_v6, %v163_v63 }
  0x50   :  { %2354 = vmatmul.mubr.msk.f32.gmra.mxu0 %vm200_vm4, %v179_v25 }
  0xdd   :  { %v2334_v0 = vpop.f32.mrf.mxu0 }
  0xde   :  { %v3027_v31 = vadd.f32 %v2334_v0, %v3024_v1 }
  0xdf   :  { %v392_v61 = vpop.f32.mrf.mxu0 }
  0xe0   :  { %v3030_v2 = vadd.f32 %v3024_v1, %v392_v61  ;;  %v472_v11 = vmax.f32 %v3027_v31, 0.0 }
  0xe1   :  { %v2337_v7 = vpop.f32.mrf.mxu0 }
  0xe2   :  { %v471_v4 = vmax.f32 %v3030_v2, 0.0  ;;  %v3038_v16 = vadd.f32 %v2337_v7, %v3024_v1  ;;  %v489_v56 = vsel %vm487_vm1, %v472_v11, 0.0 }
  0xe3   :  { %v402_v6 = vpop.f32.mrf.mxu0 }
  0xe4   :  { %v488_v10 = vsel %vm487_vm1, %v471_v4, 0.0  ;;  %v3041_v17 = vadd.f32 %v3024_v1, %v402_v6  ;;  %v474_v24 = vmax.f32 %v3038_v16, 0.0 }
  0xe5   :  { %v490_v22 = vadd.f32 %v489_v56, %v488_v10 }
  0xe6   :  { %v473_v51 = vmax.f32 %v3041_v17, 0.0  ;;  %v493_v26 = vsel %vm487_vm1, %v474_v24, 0.0 }
  0xe8   :  { %v491_v28 = vsel %vm487_vm1, %v473_v51, 0.0  ;;  %v2340_v29 = vpop.f32.mrf.mxu0 }
  0xe9   :  { %v492_v33 = vadd.f32 %v491_v28, %v490_v22  ;;  %v3058_v36 = vadd.f32 %v2340_v29, %v3024_v1 }
  0xea   :  { %v412_v13 = vpop.f32.mrf.mxu0 }
  0xeb   :  { %v3052_v35 = vadd.f32 %v3024_v1, %v412_v13  ;;  %v494_v37 = vadd.f32 %v493_v26, %v492_v33  ;;  %v476_v38 = vmax.f32 %v3058_v36, 0.0 }
  0xed   :  { %v475_v12 = vmax.f32 %v3052_v35, 0.0  ;;  %v497_v48 = vsel %vm487_vm1, %v476_v38, 0.0 }
  0xef   :  { %v495_v30 = vsel %vm487_vm1, %v475_v12, 0.0 }
  0xf0   :  { %v496_v41 = vadd.f32 %v495_v30, %v494_v37 }
  0xf2   :  { %v2343_v21 = vpop.f32.mrf.mxu0  ;;  %v498_v5 = vadd.f32 %v497_v48, %v496_v41 }
  0xf3   :  { %v3066_v42 = vadd.f32 %v2343_v21, %v3024_v1 }
  0xf4   :  { %v422_v44 = vpop.f32.mrf.mxu0 }
  0xf5   :  { %v3075_v49 = vadd.f32 %v3024_v1, %v422_v44  ;;  %v478_v57 = vmax.f32 %v3066_v42, 0.0 }
  0xf7   :  { %v477_v55 = vmax.f32 %v3075_v49, 0.0  ;;  %v501_v14 = vsel %vm487_vm1, %v478_v57, 0.0 }
  0xf8   :  { %v2346_v59 = vpop.f32.mrf.mxu0 }
  0xf9   :  { %v499_v46 = vsel %vm487_vm1, %v477_v55, 0.0  ;;  %v3095_v9 = vadd.f32 %v2346_v59, %v3024_v1 }
  0xfa   :  { %v500_v58 = vadd.f32 %v499_v46, %v498_v5  ;;  %v432_v8 = vpop.f32.mrf.mxu0 }
  0xfb   :  { %v3098_v63 = vadd.f32 %v3024_v1, %v432_v8  ;;  %v480_v7 = vmax.f32 %v3095_v9, 0.0 }
  0xfc   :  { %v502_v25 = vadd.f32 %v501_v14, %v500_v58 }
  0xfd   :  { %v479_v0 = vmax.f32 %v3098_v63, 0.0  ;;  %v505_v29 = vsel %vm487_vm1, %v480_v7, 0.0 }
  0xfe   :  { %v2349_v61 = vpop.f32.mrf.mxu0 }
  0xff   :  { %v503_v6 = vsel %vm487_vm1, %v479_v0, 0.0  ;;  %v3113_v33 = vadd.f32 %v2349_v61, %v3024_v1 }
 0x100   :  { %v442_v10 = vpop.f32.mrf.mxu0  ;;  %v504_v56 = vadd.f32 %v503_v6, %v502_v25 }
 0x101   :  { %v3106_v22 = vadd.f32 %v3024_v1, %v442_v10  ;;  %v482_v37 = vmax.f32 %v3113_v33, 0.0 }
 0x102   :  { %v506_v13 = vadd.f32 %v505_v29, %v504_v56 }
 0x103   :  { %v481_v28 = vmax.f32 %v3106_v22, 0.0  ;;  %v509_v18 = vsel %vm487_vm1, %v482_v37, 0.0 }
 0x105   :  { %v507_v26 = vsel %vm487_vm1, %v481_v28, 0.0 }
 0x106   :  { %v2352_v30 = vpop.f32.mrf.mxu0  ;;  %v508_v41 = vadd.f32 %v507_v26, %v506_v13 }
 0x107   :  { %v3126_v48 = vadd.f32 %v2352_v30, %v3024_v1 }
 0x108   :  { %v452_v21 = vpop.f32.mrf.mxu0  ;;  %v510_v47 = vadd.f32 %v509_v18, %v508_v41 }
 0x109   :  { %v3120_v44 = vadd.f32 %v3024_v1, %v452_v21  ;;  %v484_v3 = vmax.f32 %v3126_v48, 0.0 }
 0x10b   :  { %v483_v5 = vmax.f32 %v3120_v44, 0.0  ;;  %v513_v14 = vsel %vm487_vm1, %v484_v3, 0.0 }
 0x10d   :  { %v511_v53 = vsel %vm487_vm1, %v483_v5, 0.0 }
 0x10e   :  { %v512_v46 = vadd.f32 %v511_v53, %v510_v47 }
 0x110   :  { %v2355_v59 = vpop.f32.mrf.mxu0  ;;  %v514_v61 = vadd.f32 %v513_v14, %v512_v46 }
 0x111   :  { %v3132_v58 = vadd.f32 %v2355_v59, %v3024_v1 }
 0x112   :  { %v462_v8 = vpop.f32.mrf.mxu0 }
 0x113   :  { %v463_v25 = vadd.f32 %v3024_v1, %v462_v8  ;;  %v486_v6 = vmax.f32 %v3132_v58, 0.0 }
 0x115   :  { %v485_v10 = vmax.f32 %v463_v25, 0.0  ;;  %v517_v13 = vsel %vm487_vm1, %v486_v6, 0.0 }
 0x117   :  { %v515_v56 = vsel %vm487_vm1, %v485_v10, 0.0 }
 0x118   :  { %v516_v29 = vadd.f32 %v515_v56, %v514_v61 }
 0x11a   :  { %v518_v26 = vadd.f32 %v517_v13, %v516_v29 }
 0x11c   :  { %v519_v30 = vrot.slane %v518_v26, 4 }
 0x11e   :  { %v520_v41 = vadd.f32 %v519_v30, %v518_v26 }
 0x120   :  { %v521_v21 = vrot.slane %v520_v41, 2 }
 0x122   :  { %v522_v44 = vadd.f32 %v521_v21, %v520_v41 }
 0x124   :  { %v523_v18 = vrot.slane %v522_v44, 1 }
 0x126   :  { %v524_v48 = vadd.f32 %v523_v18, %v522_v44 }
 0x128   :  { %v526_v47 = vmul.f32 0.0078125, %v524_v48 }
 0x12a   :  { %v3141_v1 = vsub.f32 %v471_v4, %v526_v47  ;;  %v3145_v53 = vsub.f32 %v472_v11, %v526_v47  ;;  %v3149_v46 = vsub.f32 %v473_v51, %v526_v47  ;;  %v3153_v59 = vsub.f32 %v474_v24, %v526_v47 }
 0x12b   :  { %v3161_v4 = vsub.f32 %v475_v12, %v526_v47  ;;  %v3167_v11 = vsub.f32 %v476_v38, %v526_v47  ;;  %v3175_v35 = vsub.f32 %v477_v55, %v526_v47  ;;  %v3182_v38 = vsub.f32 %v478_v57, %v526_v47 }
 0x12c   :  { %v543_v58 = vmul.f32 %v3141_v1, %v3141_v1  ;;  %v544_v2 = vmul.f32 %v3145_v53, %v3145_v53  ;;  %v545_v31 = vmul.f32 %v3149_v46, %v3149_v46  ;;  %v546_v16 = vmul.f32 %v3153_v59, %v3153_v59 }
 0x12d   :  { %v547_v12 = vmul.f32 %v3161_v4, %v3161_v4  ;;  %v548_v14 = vmul.f32 %v3167_v11, %v3167_v11  ;;  %v3189_v49 = vsub.f32 %v479_v0, %v526_v47  ;;  %v549_v55 = vmul.f32 %v3175_v35, %v3175_v35 }
 0x12e   :  { %v559_v17 = vsel %vm487_vm1, %v543_v58, 0.0  ;;  %v560_v51 = vsel %vm487_vm1, %v544_v2, 0.0  ;;  %v562_v8 = vsel %vm487_vm1, %v545_v31, 0.0  ;;  %v564_v25 = vsel %vm487_vm1, %v546_v16, 0.0 }
 0x12f   :  { %v561_v24 = vadd.f32 %v560_v51, %v559_v17  ;;  %v566_v56 = vsel %vm487_vm1, %v547_v12, 0.0  ;;  %v3196_v42 = vsub.f32 %v480_v7, %v526_v47  ;;  %v550_v57 = vmul.f32 %v3182_v38, %v3182_v38 }
 0x130   :  { %v568_v13 = vsel %vm487_vm1, %v548_v14, 0.0  ;;  %v3203_v63 = vsub.f32 %v481_v28, %v526_v47  ;;  %v551_v0 = vmul.f32 %v3189_v49, %v3189_v49  ;;  %v570_v30 = vsel %vm487_vm1, %v549_v55, 0.0 }
 0x131   :  { %v563_v36 = vadd.f32 %v562_v8, %v561_v24  ;;  %v3210_v9 = vsub.f32 %v482_v37, %v526_v47  ;;  %v552_v7 = vmul.f32 %v3196_v42, %v3196_v42  ;;  %v572_v21 = vsel %vm487_vm1, %v550_v57, 0.0 }
 0x132   :  { %v3215_v18 = vsub.f32 %v483_v5, %v526_v47  ;;  %v553_v22 = vmul.f32 %v3203_v63, %v3203_v63  ;;  %v574_v28 = vsel %vm487_vm1, %v551_v0, 0.0  ;;  %v3220_v58 = vsub.f32 %v484_v3, %v526_v47 }
 0x133   :  { %v565_v61 = vadd.f32 %v564_v25, %v563_v36  ;;  %v554_v33 = vmul.f32 %v3210_v9, %v3210_v9  ;;  %v576_v37 = vsel %vm487_vm1, %v552_v7, 0.0  ;;  %v3225_v31 = vsub.f32 %v485_v10, %v526_v47 }
 0x134   :  { %v555_v5 = vmul.f32 %v3215_v18, %v3215_v18  ;;  %v578_v16 = vsel %vm487_vm1, %v553_v22, 0.0  ;;  %v3230_v51 = vsub.f32 %v486_v6, %v526_v47  ;;  %v556_v3 = vmul.f32 %v3220_v58, %v3220_v58  ;;  %v599_v22 = vld [vmem:[%s4030_s2 + $0x1] sm:$0x1] }
 0x135   :  { %v567_v29 = vadd.f32 %v566_v56, %v565_v61  ;;  %v580_v24 = vsel %vm487_vm1, %v554_v33, 0.0  ;;  %v557_v8 = vmul.f32 %v3225_v31, %v3225_v31 }
 0x136   :  { %v582_v10 = vsel %vm487_vm1, %v555_v5, 0.0  ;;  %v558_v14 = vmul.f32 %v3230_v51, %v3230_v51  ;;  %v584_v25 = vsel %vm487_vm1, %v556_v3, 0.0 }
 0x137   :  { %v569_v26 = vadd.f32 %v568_v13, %v567_v29  ;;  %v586_v6 = vsel %vm487_vm1, %v557_v8, 0.0 }
 0x138   :  { %v588_v55 = vsel %vm487_vm1, %v558_v14, 0.0 }
 0x139   :  { %v571_v41 = vadd.f32 %v570_v30, %v569_v26 }
 0x13b   :  { %v573_v44 = vadd.f32 %v572_v21, %v571_v41  ;;  %v601_v21 = vlaneseq }
 0x13d   :  { %v575_v48 = vadd.f32 %v574_v28, %v573_v44  ;;  %v602_v44 = vshrl.u32 %v601_v21, 7 }
 0x13f   :  { %v577_v2 = vadd.f32 %v576_v37, %v575_v48  ;;  %v3247_v28 = vsub.s32 0, %v602_v44 }
 0x141   :  { %v579_v17 = vadd.f32 %v578_v16, %v577_v2  ;;  %v1949_v2 = vld [vmem:[%s4030_s2 + $0x2] ss:$0 sm:$0xff] }
 0x143   :  { %v581_v12 = vadd.f32 %v580_v24, %v579_v17 }
 0x145   :  { %v583_v36 = vadd.f32 %v582_v10, %v581_v12 }
 0x147   :  { %v585_v61 = vadd.f32 %v584_v25, %v583_v36 }
 0x149   :  { %v587_v47 = vadd.f32 %v586_v6, %v585_v61 }
 0x14b   :  { %v589_v56 = vadd.f32 %v588_v55, %v587_v47 }
 0x14d   :  { %v590_v29 = vrot.slane %v589_v56, 4 }
 0x14f   :  { %v591_v57 = vadd.f32 %v590_v29, %v589_v56 }
 0x151   :  { %v592_v13 = vrot.slane %v591_v57, 2 }
 0x153   :  { %v593_v26 = vadd.f32 %v592_v13, %v591_v57 }
 0x155   :  { %v594_v0 = vrot.slane %v593_v26, 1 }
 0x157   :  { %v595_v30 = vadd.f32 %v594_v0, %v593_v26 }
 0x159   :  { %v596_v41 = vmul.f32 0.0078125, %v595_v30 }
 0x15b   :  { %v597_v7 = vadd.f32 1e-05, %v596_v41 }
 0x15d   :  { %2553 = vrsqrt.f32 %v597_v7 }
 0x16a   :  { %v2554_v48 = vpop.eup %2553 }
 0x16b   :  { %v600_v33 = vmul.f32 %v2554_v48, %v599_v22 }
 0x16d   :  { %v604_v37 = vrot.slane %v600_v33, %v3247_v28 }
 0x16f   :  { %v605_v5 = vmul.f32 %v604_v37, %v3141_v1  ;;  %v606_v16 = vmul.f32 %v604_v37, %v3145_v53  ;;  %v607_v17 = vmul.f32 %v604_v37, %v3149_v46  ;;  %v608_v12 = vmul.f32 %v604_v37, %v3153_v59 }
 0x170   :  { %v609_v10 = vmul.f32 %v604_v37, %v3161_v4  ;;  %v610_v1 = vmul.f32 %v604_v37, %v3167_v11  ;;  %v611_v53 = vmul.f32 %v604_v37, %v3175_v35  ;;  %v612_v59 = vmul.f32 %v604_v37, %v3182_v38 }
 0x171   :  { %v626_v3 = vadd.f32 %v1949_v2, %v605_v5  ;;  %v627_v24 = vadd.f32 %v1949_v2, %v606_v16  ;;  %v628_v8 = vadd.f32 %v1949_v2, %v607_v17  ;;  %v629_v36 = vadd.f32 %v1949_v2, %v608_v12 }
 0x172   :  { %v630_v14 = vadd.f32 %v1949_v2, %v609_v10  ;;  %v631_v46 = vadd.f32 %v1949_v2, %v610_v1  ;;  %v632_v25 = vadd.f32 %v1949_v2, %v611_v53  ;;  %v613_v4 = vmul.f32 %v604_v37, %v3189_v49 }
 0x173   :  { %2364 = vmatprep.mubr.msk.f32.mxu1 %vm487_vm1, %v626_v3  ;;  %v633_v61 = vadd.f32 %v1949_v2, %v612_v59  ;;  %v614_v11 = vmul.f32 %v604_v37, %v3196_v42  ;;  %v615_v35 = vmul.f32 %v604_v37, %v3203_v63  ;;  %v616_v38 = vmul.f32 %v604_v37, %v3210_v9 }
 0x174   :  { %2365 = vmatmul.mubr.msk.f32.vlgmr.msra.gmra.mxu1 %vm487_vm1, %v627_v24  ;;  %v634_v6 = vadd.f32 %v1949_v2, %v613_v4  ;;  %v617_v49 = vmul.f32 %v604_v37, %v3215_v18  ;;  %v618_v42 = vmul.f32 %v604_v37, %v3220_v58  ;;  %v619_v29 = vmul.f32 %v604_v37, %v3225_v31  ;;  %v1931_v58 = vld [vmem:[%s4030_s2 + $0xa] ss:$0 sm:$0xff] }
 0x175   :  { %2367 = vmatprep.mubr.msk.f32.mxu1 %vm487_vm1, %v628_v8  ;;  %v635_v47 = vadd.f32 %v1949_v2, %v614_v11  ;;  %v636_v55 = vadd.f32 %v1949_v2, %v615_v35  ;;  %v637_v56 = vadd.f32 %v1949_v2, %v616_v38  ;;  %v620_v9 = vmul.f32 %v604_v37, %v3230_v51 }
 0x176   :  { %v638_v63 = vadd.f32 %v1949_v2, %v617_v49  ;;  %v639_v57 = vadd.f32 %v1949_v2, %v618_v42  ;;  %v640_v13 = vadd.f32 %v1949_v2, %v619_v29  ;;  %v199_v31 = vmul.f32 %v1931_v58, %v3014_v20 }
 0x177   :  { %v641_v18 = vadd.f32 %v1949_v2, %v620_v9  ;;  %v198_v0 = vmul.f32 %v1931_v58, %v3003_v50  ;;  %v197_v51 = vmul.f32 %v1931_v58, %v2997_v45  ;;  %v196_v7 = vmul.f32 %v1931_v58, %v2987_v34 }
 0x178   :  { %2368 = vmatmul.mubr.msk.f32.gmra.mxu1 %vm487_vm1, %v629_v36  ;;  %v246_v26 = vsel %vm200_vm4, %v199_v31, 0.0  ;;  %v195_v22 = vmul.f32 %v1931_v58, %v2971_v62  ;;  %v194_v50 = vmul.f32 %v1931_v58, %v2959_v43  ;;  %v193_v48 = vmul.f32 %v1931_v58, %v2945_v39 }
 0x179   :  { %2370 = vmatprep.mubr.msk.f32.mxu1 %vm487_vm1, %v630_v14  ;;  %247 = vadd.xlane.f32.xlu0 %v246_v26  ;;  %v243_v30 = vsel %vm200_vm4, %v198_v0, 0.0  ;;  %v240_v41 = vsel %vm200_vm4, %v197_v51, 0.0  ;;  %v237_v44 = vsel %vm200_vm4, %v196_v7, 0.0  ;;  %v192_v37 = vmul.f32 %v1931_v58, %v2923_v15 }
 0x17a   :  { %241 = vadd.xlane.f32.xlu1 %v240_v41  ;;  %v234_v20 = vsel %vm200_vm4, %v195_v22, 0.0  ;;  %v231_v45 = vsel %vm200_vm4, %v194_v50, 0.0  ;;  %v228_v33 = vsel %vm200_vm4, %v193_v48, 0.0  ;;  %v191_v62 = vmul.f32 %v1931_v58, %v2904_v60 }
 0x17b   :  { %v225_v34 = vsel %vm200_vm4, %v192_v37, 0.0  ;;  %v190_v5 = vmul.f32 %v1931_v58, %v2871_v23  ;;  %v189_v39 = vmul.f32 %v1931_v58, %v2850_v52  ;;  %v188_v15 = vmul.f32 %v1931_v58, %v2823_v54 }
 0x17c   :  { %2371 = vmatmul.mubr.msk.f32.gmra.mxu1 %vm487_vm1, %v631_v46  ;;  %v222_v2 = vsel %vm200_vm4, %v191_v62, 0.0  ;;  %v187_v60 = vmul.f32 %v1931_v58, %v2801_v40  ;;  %v186_v23 = vmul.f32 %v1931_v58, %v2788_v32  ;;  %v185_v52 = vmul.f32 %v1931_v58, %v2778_v27  ;;  %v3323_v40 = vld [vmem:[%s4030_s2 + $0x3] ss:$0 sm:$0xff] }
 0x17d   :  { %2373 = vmatprep.mubr.msk.f32.mxu1 %vm487_vm1, %v632_v25  ;;  %244 = vadd.xlane.f32.xlu0 %v243_v30  ;;  %v219_v43 = vsel %vm200_vm4, %v190_v5, 0.0  ;;  %v216_v16 = vsel %vm200_vm4, %v189_v39, 0.0  ;;  %v213_v17 = vsel %vm200_vm4, %v188_v15, 0.0  ;;  %v184_v54 = vmul.f32 %v1931_v58, %v2774_v19 }
 0x17e   :  { %238 = vadd.xlane.f32.xlu1 %v237_v44  ;;  %v210_v3 = vsel %vm200_vm4, %v187_v60, 0.0  ;;  %v207_v24 = vsel %vm200_vm4, %v186_v23, 0.0  ;;  %v204_v12 = vsel %vm200_vm4, %v185_v52, 0.0 }
 0x17f   :  { %v201_v8 = vsel %vm200_vm4, %v184_v54, 0.0 }
 0x180   :  { %2374 = vmatmul.mubr.msk.f32.gmra.mxu1 %vm487_vm1, %v633_v61 }
 0x181   :  { %2376 = vmatprep.mubr.msk.f32.mxu1 %vm487_vm1, %v634_v6  ;;  %235 = vadd.xlane.f32.xlu0 %v234_v20 }
 0x182   :  { %232 = vadd.xlane.f32.xlu1 %v231_v45 }
 0x184   :  { %2377 = vmatmul.mubr.msk.f32.gmra.mxu1 %vm487_vm1, %v635_v47 }
 0x185   :  { %2379 = vmatprep.mubr.msk.f32.mxu1 %vm487_vm1, %v636_v55  ;;  %229 = vadd.xlane.f32.xlu0 %v228_v33 }
 0x186   :  { %226 = vadd.xlane.f32.xlu1 %v225_v34 }
 0x188   :  { %2380 = vmatmul.mubr.msk.f32.gmra.mxu1 %vm487_vm1, %v637_v56 }
 0x189   :  { %2382 = vmatprep.mubr.msk.f32.mxu1 %vm487_vm1, %v638_v63  ;;  %223 = vadd.xlane.f32.xlu0 %v222_v2 }
 0x18a   :  { %220 = vadd.xlane.f32.xlu1 %v219_v43 }
 0x18c   :  { %2383 = vmatmul.mubr.msk.f32.gmra.mxu1 %vm487_vm1, %v639_v57 }
 0x18d   :  { %2385 = vmatprep.mubr.msk.f32.mxu1 %vm487_vm1, %v640_v13  ;;  %217 = vadd.xlane.f32.xlu0 %v216_v16 }
 0x18e   :  { %214 = vadd.xlane.f32.xlu1 %v213_v17 }
 0x190   :  { %2386 = vmatmul.mubr.msk.f32.gmra.mxu1 %vm487_vm1, %v641_v18 }
 0x191   :  { %211 = vadd.xlane.f32.xlu0 %v210_v3 }
 0x192   :  { %208 = vadd.xlane.f32.xlu1 %v207_v24 }
 0x195   :  { %205 = vadd.xlane.f32.xlu0 %v204_v12 }
 0x196   :  { %202 = vadd.xlane.f32.xlu1 %v201_v8 }
 0x234   :  { %v2366_v32 = vpop.f32.mrf.mxu1 }
 0x235   :  { %v3326_v10 = vadd.f32 %v2366_v32, %v3323_v40 }
 0x236   :  { %v765_v36 = vpop.f32.mrf.mxu1 }
 0x237   :  { %v3329_v27 = vadd.f32 %v3323_v40, %v765_v36  ;;  %v845_v19 = vmax.f32 %v3326_v10, 0.0 }
 0x238   :  { %v2369_v1 = vpop.f32.mrf.mxu1 }
 0x239   :  { %v844_v14 = vmax.f32 %v3329_v27, 0.0  ;;  %v3334_v53 = vadd.f32 %v2369_v1, %v3323_v40  ;;  %v861_v61 = vsel %vm487_vm1, %v845_v19, 0.0 }
 0x23a   :  { %v775_v46 = vpop.f32.mrf.mxu1 }
 0x23b   :  { %v860_v59 = vsel %vm487_vm1, %v844_v14, 0.0  ;;  %v3340_v25 = vadd.f32 %v3323_v40, %v775_v46  ;;  %v847_v11 = vmax.f32 %v3334_v53, 0.0 }
 0x23c   :  { %v2372_v4 = vpop.f32.mrf.mxu1  ;;  %v862_v47 = vadd.f32 %v861_v61, %v860_v59 }
 0x23d   :  { %v846_v6 = vmax.f32 %v3340_v25, 0.0  ;;  %v3348_v35 = vadd.f32 %v2372_v4, %v3323_v40  ;;  %v865_v29 = vsel %vm487_vm1, %v847_v11, 0.0 }
 0x23e   :  { %v785_v38 = vpop.f32.mrf.mxu1 }
 0x23f   :  { %v863_v55 = vsel %vm487_vm1, %v846_v6, 0.0  ;;  %v3354_v49 = vadd.f32 %v3323_v40, %v785_v38  ;;  %v849_v63 = vmax.f32 %v3348_v35, 0.0 }
 0x240   :  { %v864_v56 = vadd.f32 %v863_v55, %v862_v47  ;;  %v2375_v42 = vpop.f32.mrf.mxu1 }
 0x241   :  { %v848_v57 = vmax.f32 %v3354_v49, 0.0  ;;  %v3362_v9 = vadd.f32 %v2375_v42, %v3323_v40  ;;  %v869_v51 = vsel %vm487_vm1, %v849_v63, 0.0 }
 0x242   :  { %v866_v13 = vadd.f32 %v865_v29, %v864_v56  ;;  %v795_v18 = vpop.f32.mrf.mxu1 }
 0x243   :  { %v867_v58 = vsel %vm487_vm1, %v848_v57, 0.0  ;;  %v3368_v31 = vadd.f32 %v3323_v40, %v795_v18  ;;  %v851_v30 = vmax.f32 %v3362_v9, 0.0  ;;  %v248_v18 = vpop.xlane.xlu0 %247 }
 0x244   :  { %v868_v26 = vadd.f32 %v867_v58, %v866_v13  ;;  %v2378_v0 = vpop.f32.mrf.mxu1  ;;  %v3432_v58 = vand.u32 127, %v601_v21 }
 0x245   :  { %v850_v41 = vmax.f32 %v3368_v31, 0.0  ;;  %v3376_v7 = vadd.f32 %v2378_v0, %v3323_v40  ;;  %v873_v33 = vsel %vm487_vm1, %v851_v30, 0.0 }
 0x246   :  { %v870_v44 = vadd.f32 %v869_v51, %v868_v26  ;;  %v805_v22 = vpop.f32.mrf.mxu1  ;;  %v3443_v21 = vadd.s32 128, %v3432_v58 }
 0x247   :  { %v871_v20 = vsel %vm487_vm1, %v850_v41, 0.0  ;;  %v3382_v50 = vadd.f32 %v3323_v40, %v805_v22  ;;  %v853_v37 = vmax.f32 %v3376_v7, 0.0 }
 0x248   :  { %v872_v45 = vadd.f32 %v871_v20, %v870_v44  ;;  %v2381_v48 = vpop.f32.mrf.mxu1  ;;  %v245_v20 = vpop.xlane.xlu0 %244 }
 0x249   :  { %v852_v34 = vmax.f32 %v3382_v50, 0.0  ;;  %v3390_v62 = vadd.f32 %v2381_v48, %v3323_v40  ;;  %v877_v17 = vsel %vm487_vm1, %v853_v37, 0.0  ;;  %v2544_v48 = vtrunc.f32 %v245_v20 }
 0x24a   :  { %v874_v2 = vadd.f32 %v873_v33, %v872_v45  ;;  %v815_v5 = vpop.f32.mrf.mxu1  ;;  %v242_v45 = vpop.xlane.xlu1 %241 }
 0x24b   :  { %v875_v43 = vsel %vm487_vm1, %v852_v34, 0.0  ;;  %v3396_v39 = vadd.f32 %v3323_v40, %v815_v5  ;;  %v855_v60 = vmax.f32 %v3390_v62, 0.0  ;;  %v2542_v33 = vtrunc.f32 %v242_v45 }
 0x24c   :  { %v876_v16 = vadd.f32 %v875_v43, %v874_v2  ;;  %v2384_v15 = vpop.f32.mrf.mxu1  ;;  %v3446_v43 = vcvt.f32.s32 %v2544_v48 }
 0x24d   :  { %v854_v3 = vmax.f32 %v3396_v39, 0.0  ;;  %v3404_v23 = vadd.f32 %v2384_v15, %v3323_v40  ;;  %v881_v36 = vsel %vm487_vm1, %v855_v60, 0.0 }
 0x24e   :  { %v878_v24 = vadd.f32 %v877_v17, %v876_v16  ;;  %v825_v52 = vpop.f32.mrf.mxu1  ;;  %v3448_v16 = vcvt.f32.s32 %v2542_v33  ;;  %v239_v17 = vpop.xlane.xlu1 %238  ;;  %vm1045_vm6 = vcmp.eq.s32.totalorder %v3446_v43, %v3443_v21  ;;  %vm1044_vm7 = vcmp.eq.s32.totalorder %v3446_v43, %v3432_v58 }
 0x24f   :  { %v879_v12 = vsel %vm487_vm1, %v854_v3, 0.0  ;;  %v3410_v54 = vadd.f32 %v3323_v40, %v825_v52  ;;  %v857_v1 = vmax.f32 %v3404_v23, 0.0  ;;  %v2540_v52 = vtrunc.f32 %v239_v17 }
 0x250   :  { %v880_v8 = vadd.f32 %v879_v12, %v878_v24  ;;  %v2387_v32 = vpop.f32.mrf.mxu1  ;;  %v2595_v24 = vmov 1.0   ;;  %vm1043_vm8 = vcmp.eq.s32.totalorder %v3448_v16, %v3443_v21  ;;  %vm1042_vm12 = vcmp.eq.s32.totalorder %v3448_v16, %v3432_v58 }
 0x251   :  { %v856_v46 = vmax.f32 %v3410_v54, 0.0  ;;  %v3418_v59 = vadd.f32 %v2387_v32, %v3323_v40  ;;  %v885_v56 = vsel %vm487_vm1, %v857_v1, 0.0  ;;  %v2046_v32 = vadd.s32 4294967040, %v3446_v43 }
 0x252   :  { %v882_v4 = vadd.f32 %v881_v36, %v880_v8  ;;  %v835_v61 = vpop.f32.mrf.mxu1  ;;  %v236_v8 = vpop.xlane.xlu0 %235  ;;  %v3467_v36 = vcvt.f32.s32 %v2540_v52 }
 0x253   :  { %v883_v47 = vsel %vm487_vm1, %v856_v46, 0.0  ;;  %v3424_v38 = vadd.f32 %v3323_v40, %v835_v61  ;;  %v859_v42 = vmax.f32 %v3418_v59, 0.0  ;;  %v2546_v40 = vtrunc.f32 %v248_v18  ;;  %v233_v18 = vpop.xlane.xlu1 %232 }
 0x254   :  { %v884_v55 = vadd.f32 %v883_v47, %v882_v4  ;;  %v2538_v4 = vtrunc.f32 %v236_v8  ;;  %v2045_v61 = vadd.s32 4294967040, %v3448_v16  ;;  %vm1296_vm9 = vcmp.eq.s32.totalorder %v2046_v32, %v3443_v21 }
 0x255   :  { %v858_v29 = vmax.f32 %v3424_v38, 0.0  ;;  %v889_v51 = vsel %vm487_vm1, %v859_v42, 0.0  ;;  %v3440_v44 = vcvt.f32.s32 %v2546_v40  ;;  %vm1295_vm10 = vcmp.eq.s32.totalorder %v2046_v32, %v3432_v58 }
 0x256   :  { %v886_v13 = vadd.f32 %v885_v56, %v884_v55  ;;  %v3474_v55 = vcvt.f32.s32 %v2538_v4  ;;  %vm1294_vm11 = vcmp.eq.s32.totalorder %v2045_v61, %v3443_v21  ;;  %vm1293_vm13 = vcmp.eq.s32.totalorder %v2045_v61, %v3432_v58 }
 0x257   :  { %v887_v26 = vsel %vm487_vm1, %v858_v29, 0.0  ;;  %v2047_v5 = vadd.s32 4294967040, %v3440_v44  ;;  %vm1047_vm2 = vcmp.eq.s32.totalorder %v3440_v44, %v3443_v21  ;;  %vm1046_vm4 = vcmp.eq.s32.totalorder %v3440_v44, %v3432_v58  ;;  %v227_v20 = vpop.xlane.xlu1 %226 }
 0x258   :  { %v888_v0 = vadd.f32 %v887_v26, %v886_v13  ;;  %2000 = vmatprep.subr.msk.mxu1 %vm1047_vm2, %v2595_v24  ;;  %vm1041_vm14 = vcmp.eq.s32.totalorder %v3467_v36, %v3443_v21  ;;  %v2044_v13 = vadd.s32 4294967040, %v3467_v36  ;;  %vm1040_vm15 = vcmp.eq.s32.totalorder %v3467_v36, %v3432_v58 }
 0x259   :  { %vm1298_vm3 = vcmp.eq.s32.totalorder %v2047_v5, %v3443_v21  ;;  %vm1297_vm5 = vcmp.eq.s32.totalorder %v2047_v5, %v3432_v58  ;;  %2001 = vmatpush1.msk.msra.mxu1 %vm1046_vm4, %v2595_v24  ;;  %vm1039_vm0 = vcmp.eq.s32.totalorder %v3474_v55, %v3443_v21  ;;  %v2043_v26 = vadd.s32 4294967040, %v3474_v55 }
 0x25a   :  { %v890_v22 = vadd.f32 %v889_v51, %v888_v0  ;;  %2080 = vmatprep.subr.msk.mxu0 %vm1298_vm3, %v2595_v24  ;;  %2002 = vmatprep.subr.msk.mxu1 %vm1045_vm6, %v2595_v24  ;;  %v2536_v0 = vtrunc.f32 %v233_v18  ;;  %vm1292_vm2 = vcmp.eq.s32.totalorder %v2044_v13, %v3443_v21  ;;  %vm1291_vm3 = vcmp.eq.s32.totalorder %v2044_v13, %v3432_v58  ;;  %v3498_v51 = vpop.xlane.xlu0 %229 }
 0x25b   :  { %2081 = vmatpush1.msk.msra.mxu0 %vm1297_vm5, %v2595_v24  ;;  %2003 = vmatpush1.msk.msra.mxu1 %vm1044_vm7, %v2595_v24  ;;  %vm1290_vm4 = vcmp.eq.s32.totalorder %v2043_v26, %v3443_v21  ;;  %vm1038_vm5 = vcmp.eq.s32.totalorder %v3474_v55, %v3432_v58  ;;  %vm1289_vm6 = vcmp.eq.s32.totalorder %v2043_v26, %v3432_v58  ;;  %v2534_v10 = vtrunc.f32 %v3498_v51 }
 0x25c   :  { %v891_v2 = vrot.slane %v890_v22, 4  ;;  %2082 = vmatprep.subr.msk.mxu0 %vm1296_vm9, %v2595_v24  ;;  %2004 = vmatprep.subr.msk.mxu1 %vm1043_vm8, %v2595_v24  ;;  %v3517_v33 = vcvt.f32.s32 %v2536_v0 }
 0x25d   :  { %2083 = vmatpush1.msk.msra.mxu0 %vm1295_vm10, %v2595_v24  ;;  %2005 = vmatpush1.msk.msra.mxu1 %vm1042_vm12, %v2595_v24 }
 0x25e   :  { %v892_v15 = vadd.f32 %v891_v2, %v890_v22  ;;  %2084 = vmatprep.subr.msk.mxu0 %vm1294_vm11, %v2595_v24  ;;  %2006 = vmatprep.subr.msk.mxu1 %vm1041_vm14, %v2595_v24  ;;  %vm1037_vm7 = vcmp.eq.s32.totalorder %v3517_v33, %v3443_v21  ;;  %vm1036_vm8 = vcmp.eq.s32.totalorder %v3517_v33, %v3432_v58 }
 0x25f   :  { %2085 = vmatpush1.msk.msra.mxu0 %vm1293_vm13, %v2595_v24  ;;  %2007 = vmatpush1.msk.msra.mxu1 %vm1040_vm15, %v2595_v24 }
 0x260   :  { %v893_v12 = vrot.slane %v892_v15, 2  ;;  %2086 = vmatprep.subr.msk.mxu0 %vm1292_vm2, %v2595_v24  ;;  %2008 = vmatprep.subr.msk.mxu1 %vm1039_vm0, %v2595_v24 }
 0x261   :  { %2087 = vmatpush1.msk.msra.mxu0 %vm1291_vm3, %v2595_v24  ;;  %2009 = vmatpush1.msk.msra.mxu1 %vm1038_vm5, %v2595_v24 }
 0x262   :  { %v894_v47 = vadd.f32 %v893_v12, %v892_v15  ;;  %2088 = vmatprep.subr.msk.mxu0 %vm1290_vm4, %v2595_v24  ;;  %2010 = vmatprep.subr.msk.mxu1 %vm1037_vm7, %v2595_v24 }
 0x263   :  { %2089 = vmatpush1.msk.msra.mxu0 %vm1289_vm6, %v2595_v24  ;;  %2011 = vmatpush1.msk.msra.mxu1 %vm1036_vm8, %v2595_v24 }
 0x264   :  { %v895_v56 = vrot.slane %v894_v47, 1 }
 0x266   :  { %v896_v40 = vadd.f32 %v895_v56, %v894_v47 }
 0x268   :  { %v897_v22 = vmul.f32 0.0078125, %v896_v40 }
 0x26a   :  { %v3511_v45 = vsub.f32 %v844_v14, %v897_v22  ;;  %v3515_v48 = vsub.f32 %v845_v19, %v897_v22  ;;  %v3522_v2 = vsub.f32 %v846_v6, %v897_v22  ;;  %v3526_v5 = vsub.f32 %v847_v11, %v897_v22  ;;  %v224_v11 = vpop.xlane.xlu0 %223 }
 0x26b   :  { %v3530_v27 = vsub.f32 %v848_v57, %v897_v22  ;;  %v3535_v19 = vsub.f32 %v849_v63, %v897_v22  ;;  %v3539_v14 = vsub.f32 %v850_v41, %v897_v22  ;;  %v3543_v25 = vsub.f32 %v851_v30, %v897_v22  ;;  %v221_v41 = vpop.xlane.xlu1 %220 }
 0x26c   :  { %v3547_v53 = vsub.f32 %v852_v34, %v897_v22  ;;  %v3551_v6 = vsub.f32 %v853_v37, %v897_v22  ;;  %v3555_v35 = vsub.f32 %v854_v3, %v897_v22  ;;  %v3559_v49 = vsub.f32 %v855_v60, %v897_v22 }
 0x26d   :  { %v3563_v63 = vsub.f32 %v856_v46, %v897_v22  ;;  %v3567_v57 = vsub.f32 %v857_v1, %v897_v22  ;;  %v3571_v9 = vsub.f32 %v858_v29, %v897_v22  ;;  %v914_v31 = vmul.f32 %v3511_v45, %v3511_v45 }
 0x26e   :  { %v915_v30 = vmul.f32 %v3515_v48, %v3515_v48  ;;  %v3579_v7 = vsub.f32 %v859_v42, %v897_v22  ;;  %v916_v50 = vmul.f32 %v3522_v2, %v3522_v2  ;;  %v917_v37 = vmul.f32 %v3526_v5, %v3526_v5  ;;  %v218_v15 = vpop.xlane.xlu0 %217 }
 0x26f   :  { %v918_v34 = vmul.f32 %v3530_v27, %v3530_v27  ;;  %v919_v62 = vmul.f32 %v3535_v19, %v3535_v19  ;;  %v920_v39 = vmul.f32 %v3539_v14, %v3539_v14  ;;  %v921_v60 = vmul.f32 %v3543_v25, %v3543_v25  ;;  %v215_v56 = vpop.xlane.xlu1 %214 }
 0x270   :  { %v922_v3 = vmul.f32 %v3547_v53, %v3547_v53  ;;  %v923_v23 = vmul.f32 %v3551_v6, %v3551_v6  ;;  %v924_v54 = vmul.f32 %v3555_v35, %v3555_v35  ;;  %v925_v1 = vmul.f32 %v3559_v49, %v3559_v49 }
 0x271   :  { %v926_v46 = vmul.f32 %v3563_v63, %v3563_v63  ;;  %v3605_v59 = vmul.f32 %v3567_v57, %v3567_v57  ;;  %v3609_v38 = vmul.f32 %v3571_v9, %v3571_v9  ;;  %v930_v42 = vsel %vm487_vm1, %v914_v31, 0.0 }
 0x272   :  { %v931_v29 = vsel %vm487_vm1, %v915_v30, 0.0  ;;  %v3615_v17 = vmul.f32 %v3579_v7, %v3579_v7  ;;  %v933_v12 = vsel %vm487_vm1, %v916_v50, 0.0  ;;  %v935_v8 = vsel %vm487_vm1, %v917_v37, 0.0 }
 0x273   :  { %v932_v52 = vadd.f32 %v931_v29, %v930_v42  ;;  %v937_v32 = vsel %vm487_vm1, %v918_v34, 0.0  ;;  %v939_v4 = vsel %vm487_vm1, %v919_v62, 0.0  ;;  %v941_v61 = vsel %vm487_vm1, %v920_v39, 0.0 }
 0x274   :  { %v943_v47 = vsel %vm487_vm1, %v921_v60, 0.0  ;;  %v3624_v18 = vsel %vm487_vm1, %v922_v3, 0.0  ;;  %v3627_v26 = vsel %vm487_vm1, %v923_v23, 0.0  ;;  %v3630_v40 = vsel %vm487_vm1, %v924_v54, 0.0  ;;  %v212_v60 = vpop.xlane.xlu0 %211  ;;  %v209_v23 = vpop.xlane.xlu1 %208 }
 0x275   :  { %v934_v13 = vadd.f32 %v933_v12, %v932_v52  ;;  %v3633_v0 = vsel %vm487_vm1, %v925_v1, 0.0  ;;  %v3636_v51 = vsel %vm487_vm1, %v926_v46, 0.0  ;;  %v3638_v22 = vcvt.f32.s32 %v2534_v10 }
 0x276   :  { %v2532_v31 = vtrunc.f32 %v227_v20  ;;  %v2530_v50 = vtrunc.f32 %v224_v11  ;;  %v2528_v37 = vtrunc.f32 %v221_v41  ;;  %v2042_v62 = vadd.s32 4294967040, %v3517_v33 }
 0x277   :  { %v936_v30 = vadd.f32 %v935_v8, %v934_v13  ;;  %v2526_v39 = vtrunc.f32 %v218_v15  ;;  %vm1035_vm9 = vcmp.eq.s32.totalorder %v3638_v22, %v3443_v21  ;;  %v2041_v41 = vadd.s32 4294967040, %v3638_v22 }
 0x278   :  { %v3642_v34 = vcvt.f32.s32 %v2532_v31  ;;  %v3648_v3 = vcvt.f32.s32 %v2530_v50  ;;  %v3650_v20 = vcvt.f32.s32 %v2528_v37  ;;  %vm1288_vm10 = vcmp.eq.s32.totalorder %v2042_v62, %v3443_v21  ;;  %2012 = vmatprep.subr.msk.mxu1 %vm1035_vm9, %v2595_v24  ;;  %v206_v12 = vpop.xlane.xlu0 %205 }
 0x279   :  { %v938_v10 = vadd.f32 %v937_v32, %v936_v30  ;;  %vm1287_vm11 = vcmp.eq.s32.totalorder %v2042_v62, %v3432_v58  ;;  %v3657_v11 = vcvt.f32.s32 %v2526_v39  ;;  %2090 = vmatprep.subr.msk.mxu0 %vm1288_vm10, %v2595_v24  ;;  %vm1034_vm12 = vcmp.eq.s32.totalorder %v3638_v22, %v3432_v58 }
 0x27a   :  { %v2524_v1 = vtrunc.f32 %v215_v56  ;;  %vm1033_vm13 = vcmp.eq.s32.totalorder %v3642_v34, %v3443_v21  ;;  %2091 = vmatpush1.msk.msra.mxu0 %vm1287_vm11, %v2595_v24  ;;  %vm1286_vm14 = vcmp.eq.s32.totalorder %v2041_v41, %v3443_v21  ;;  %2013 = vmatpush1.msk.msra.mxu1 %vm1034_vm12, %v2595_v24  ;;  %vm1285_vm15 = vcmp.eq.s32.totalorder %v2041_v41, %v3432_v58 }
 0x27b   :  { %v940_v54 = vadd.f32 %v939_v4, %v938_v10  ;;  %v2040_v46 = vadd.s32 4294967040, %v3642_v34  ;;  %vm1032_vm0 = vcmp.eq.s32.totalorder %v3642_v34, %v3432_v58  ;;  %2092 = vmatprep.subr.msk.mxu0 %vm1286_vm14, %v2595_v24  ;;  %2014 = vmatprep.subr.msk.mxu1 %vm1033_vm13, %v2595_v24  ;;  %v2522_v15 = vtrunc.f32 %v212_v60 }
 0x27c   :  { %v3674_v29 = vcvt.f32.s32 %v2524_v1  ;;  %vm1031_vm2 = vcmp.eq.s32.totalorder %v3648_v3, %v3443_v21  ;;  %2093 = vmatpush1.msk.msra.mxu0 %vm1285_vm15, %v2595_v24  ;;  %2015 = vmatpush1.msk.msra.mxu1 %vm1032_vm0, %v2595_v24  ;;  %v2039_v52 = vadd.s32 4294967040, %v3648_v3  ;;  %vm1030_vm5 = vcmp.eq.s32.totalorder %v3648_v3, %v3432_v58 }
 0x27d   :  { %v942_v42 = vadd.f32 %v941_v61, %v940_v54  ;;  %vm1284_vm3 = vcmp.eq.s32.totalorder %v2040_v46, %v3443_v21  ;;  %vm1283_vm4 = vcmp.eq.s32.totalorder %v2040_v46, %v3432_v58  ;;  %v3687_v32 = vcvt.f32.s32 %v2522_v15  ;;  %2016 = vmatprep.subr.msk.mxu1 %vm1031_vm2, %v2595_v24 }
 0x27e   :  { %2094 = vmatprep.subr.msk.mxu0 %vm1284_vm3, %v2595_v24  ;;  %v2520_v4 = vtrunc.f32 %v209_v23  ;;  %vm1029_vm6 = vcmp.eq.s32.totalorder %v3650_v20, %v3443_v21  ;;  %vm1282_vm7 = vcmp.eq.s32.totalorder %v2039_v52, %v3443_v21  ;;  %2017 = vmatpush1.msk.msra.mxu1 %vm1030_vm5, %v2595_v24  ;;  %vm1281_vm8 = vcmp.eq.s32.totalorder %v2039_v52, %v3432_v58 }
 0x27f   :  { %v944_v8 = vadd.f32 %v943_v47, %v942_v42  ;;  %2095 = vmatpush1.msk.msra.mxu0 %vm1283_vm4, %v2595_v24  ;;  %v2038_v61 = vadd.s32 4294967040, %v3650_v20  ;;  %vm1028_vm9 = vcmp.eq.s32.totalorder %v3650_v20, %v3432_v58  ;;  %v203_v47 = vpop.xlane.xlu1 %202  ;;  %2018 = vmatprep.subr.msk.mxu1 %vm1029_vm6, %v2595_v24  ;;  %v2518_v31 = vtrunc.f32 %v206_v12 }
 0x280   :  { %2096 = vmatprep.subr.msk.mxu0 %vm1282_vm7, %v2595_v24  ;;  %v3701_v13 = vcvt.f32.s32 %v2520_v4  ;;  %vm1027_vm10 = vcmp.eq.s32.totalorder %v3657_v11, %v3443_v21  ;;  %2019 = vmatpush1.msk.msra.mxu1 %vm1028_vm9, %v2595_v24  ;;  %vm1026_vm13 = vcmp.eq.s32.totalorder %v3657_v11, %v3432_v58  ;;  %v2516_v37 = vtrunc.f32 %v203_v47 }
 0x281   :  { %v946_v56 = vadd.f32 %v3624_v18, %v944_v8  ;;  %2097 = vmatpush1.msk.msra.mxu0 %vm1281_vm8, %v2595_v24  ;;  %vm1280_vm11 = vcmp.eq.s32.totalorder %v2038_v61, %v3443_v21  ;;  %vm1279_vm12 = vcmp.eq.s32.totalorder %v2038_v61, %v3432_v58  ;;  %v2037_v18 = vadd.s32 4294967040, %v3657_v11  ;;  %2020 = vmatprep.subr.msk.mxu1 %vm1027_vm10, %v2595_v24 }
 0x282   :  { %2098 = vmatprep.subr.msk.mxu0 %vm1280_vm11, %v2595_v24  ;;  %v3715_v50 = vcvt.f32.s32 %v2518_v31  ;;  %vm1025_vm14 = vcmp.eq.s32.totalorder %v3674_v29, %v3443_v21  ;;  %2021 = vmatpush1.msk.msra.mxu1 %vm1026_vm13, %v2595_v24  ;;  %vm1024_vm2 = vcmp.eq.s32.totalorder %v3674_v29, %v3432_v58  ;;  %v3729_v39 = vcvt.f32.s32 %v2516_v37  ;;  %v970_v31 = vld [vmem:[%s4030_s2 + $0x4] sm:$0x1] }
 0x283   :  { %v948_v30 = vadd.f32 %v3627_v26, %v946_v56  ;;  %2099 = vmatpush1.msk.msra.mxu0 %vm1279_vm12, %v2595_v24  ;;  %vm1278_vm15 = vcmp.eq.s32.totalorder %v2037_v18, %v3443_v21  ;;  %vm1277_vm0 = vcmp.eq.s32.totalorder %v2037_v18, %v3432_v58  ;;  %v2036_v26 = vadd.s32 4294967040, %v3674_v29  ;;  %2022 = vmatprep.subr.msk.mxu1 %vm1025_vm14, %v2595_v24 }
 0x284   :  { %2100 = vmatprep.subr.msk.mxu0 %vm1278_vm15, %v2595_v24  ;;  %vm1023_vm3 = vcmp.eq.s32.totalorder %v3687_v32, %v3443_v21  ;;  %v2035_v60 = vadd.s32 4294967040, %v3687_v32  ;;  %2023 = vmatpush1.msk.msra.mxu1 %vm1024_vm2, %v2595_v24  ;;  %vm1022_vm6 = vcmp.eq.s32.totalorder %v3687_v32, %v3432_v58  ;;  %v2033_v41 = vadd.s32 4294967040, %v3715_v50 }
 0x285   :  { %v950_v62 = vadd.f32 %v3630_v40, %v948_v30  ;;  %2101 = vmatpush1.msk.msra.mxu0 %vm1277_vm0, %v2595_v24  ;;  %vm1276_vm4 = vcmp.eq.s32.totalorder %v2036_v26, %v3443_v21  ;;  %vm1275_vm5 = vcmp.eq.s32.totalorder %v2036_v26, %v3432_v58  ;;  %v2034_v40 = vadd.s32 4294967040, %v3701_v13  ;;  %2024 = vmatprep.subr.msk.mxu1 %vm1023_vm3, %v2595_v24  ;;  %v1967_v26 = vld [vmem:[%s4030_s2 + $0x5] ss:$0 sm:$0xff]  ;;  %s2597_s2 = smov [#allocation2]  }
 0x286   :  { %2102 = vmatprep.subr.msk.mxu0 %vm1276_vm4, %v2595_v24  ;;  %vm1274_vm7 = vcmp.eq.s32.totalorder %v2035_v60, %v3443_v21  ;;  %vm1273_vm8 = vcmp.eq.s32.totalorder %v2035_v60, %v3432_v58  ;;  %2025 = vmatpush1.msk.msra.mxu1 %vm1022_vm6, %v2595_v24  ;;  %vm1021_vm9 = vcmp.eq.s32.totalorder %v3701_v13, %v3443_v21  ;;  %v3763_v54 = vadd.s32 4294966784, %v3440_v44  ;;  %s1916_s7 = sshll.u32 %s2597_s2, 4  ;;  %s1917_s7 = int_to_ptr.vmem [resolvable:$true] %s1916_s7 }
 0x287   :  { %v952_v10 = vadd.f32 %v3633_v0, %v950_v62  ;;  %2103 = vmatpush1.msk.msra.mxu0 %vm1275_vm5, %v2595_v24  ;;  %vm1272_vm10 = vcmp.eq.s32.totalorder %v2034_v40, %v3443_v21  ;;  %vm1020_vm11 = vcmp.eq.s32.totalorder %v3701_v13, %v3432_v58  ;;  %v2032_v0 = vadd.s32 4294967040, %v3729_v39  ;;  %2026 = vmatprep.subr.msk.mxu1 %vm1021_vm9, %v2595_v24  ;;  %s2573_s8 = scalar_lea.vmem %s1917_s7, 2048  ;;  %p2578_p1 = scmp.lt.s32.totalorder %s1917_s7, %s1917_s7 }
 0x288   :  { %2104 = vmatprep.subr.msk.mxu0 %vm1274_vm7, %v2595_v24  ;;  %vm1271_vm12 = vcmp.eq.s32.totalorder %v2034_v40, %v3432_v58  ;;  %vm1019_vm13 = vcmp.eq.s32.totalorder %v3715_v50, %v3443_v21  ;;  %v955_v1 = vsel %vm487_vm1, %v3605_v59, 0.0  ;;  %2027 = vmatpush1.msk.msra.mxu1 %vm1020_vm11, %v2595_v24  ;;  %vm1270_vm14 = vcmp.eq.s32.totalorder %v2033_v41, %v3443_v21  ;;  %p2574_p0 = scmp.ne.s32.totalorder %s1917_s7, %s2573_s8  ;;  %p2579_p2 = scmp.lt.s32.totalorder %s2573_s8, %s2573_s8 }
 0x289   :  { %v954_v23 = vadd.f32 %v3636_v51, %v952_v10  ;;  %2105 = vmatpush1.msk.msra.mxu0 %vm1273_vm8, %v2595_v24  ;;  %vm1018_vm15 = vcmp.eq.s32.totalorder %v3715_v50, %v3432_v58  ;;  %v3773_v51 = vadd.s32 4294966528, %v3440_v44  ;;  %2028 = vmatprep.subr.msk.mxu1 %vm1019_vm13, %v2595_v24  ;;  %vm1269_vm0 = vcmp.eq.s32.totalorder %v2033_v41, %v3432_v58 }
 0x28a   :  { %2106 = vmatprep.subr.msk.mxu0 %vm1272_vm10, %v2595_v24  ;;  %vm1017_vm2 = vcmp.eq.s32.totalorder %v3729_v39, %v3443_v21  ;;  %v957_v59 = vsel %vm487_vm1, %v3609_v38, 0.0  ;;  %2029 = vmatpush1.msk.msra.mxu1 %vm1018_vm15, %v2595_v24  ;;  %vm1268_vm3 = vcmp.eq.s32.totalorder %v2032_v0, %v3443_v21  ;;  %vm1016_vm4 = vcmp.eq.s32.totalorder %v3729_v39, %v3432_v58  ;;  %p2580_p3 = por %p2579_p2, %p2578_p1 }
 0x28b   :  { %v956_v46 = vadd.f32 %v955_v1, %v954_v23  ;;  %2107 = vmatpush1.msk.msra.mxu0 %vm1271_vm12, %v2595_v24  ;;  %vm1518_vm5 = vcmp.eq.s32.totalorder %v3763_v54, %v3443_v21  ;;  %2030 = vmatprep.subr.msk.mxu1 %vm1017_vm2, %v2595_v24  ;;  %vm1267_vm6 = vcmp.eq.s32.totalorder %v2032_v0, %v3432_v58  ;;  %v959_v38 = vsel %vm487_vm1, %v3615_v17, 0.0 }
 0x28c   :  { %2108 = vmatprep.subr.msk.mxu0 %vm1270_vm14, %v2595_v24  ;;  %2031 = vmatpush1.msk.msra.mxu1 %vm1016_vm4, %v2595_v24  ;;  %vm1738_vm7 = vcmp.eq.s32.totalorder %v3773_v51, %v3443_v21  ;;  %v2596_v15 = vmov 0.0   ;;  %vm1517_vm1 = vcmp.eq.s32.totalorder %v3763_v54, %v3432_v58  ;;  %vm1737_vm8 = vcmp.eq.s32.totalorder %v3773_v51, %v3432_v58  ;;  %p2581_p4 = pnand %p2580_p3, %p2574_p0 }
 0x28d   :  { %v958_v44 = vadd.f32 %v957_v59, %v956_v46  ;;  %2109 = vmatpush1.msk.msra.mxu0 %vm1269_vm0, %v2595_v24  ;;  %2160 = vmatprep.subr.msk.mxu1 %vm1518_vm5, %v2595_v24  ;;  %v2203_v54 = vadd.s32 4294966528, %v3474_v55  ;;  %v2122_v51 = vadd.s32 4294966784, %v3517_v33 }
 0x28e   :  { %2110 = vmatprep.subr.msk.mxu0 %vm1268_vm3, %v2595_v24  ;;  %1208 = vmatprep.mubr.f32.mxu1 %v2596_v15 }
 0x28f   :  { %v960_v42 = vadd.f32 %v959_v38, %v958_v44  ;;  %2111 = vmatpush1.msk.msra.mxu0 %vm1267_vm6, %v2595_v24  ;;  %1427 = vmatprep.mubr.f32.mxu0 %v2596_v15 }
 0x290   :  { %2240 = vmatprep.subr.msk.mxu0 %vm1738_vm7, %v2595_v24  ;;  %vm1730_vm7 = vcmp.eq.s32.totalorder %v2203_v54, %v3443_v21 }
 0x291   :  { %v961_v52 = vrot.slane %v960_v42, 4 }
 0x293   :  { %v962_v17 = vadd.f32 %v961_v52, %v960_v42 }
 0x295   :  { %v963_v12 = vrot.slane %v962_v17, 2 }
 0x297   :  { %v964_v8 = vadd.f32 %v963_v12, %v962_v17 }
 0x299   :  { %v965_v4 = vrot.slane %v964_v8, 1 }
 0x29b   :  { %v966_v61 = vadd.f32 %v965_v4, %v964_v8 }
 0x29d   :  { %v967_v47 = vmul.f32 0.0078125, %v966_v61 }
 0x29f   :  { %v968_v56 = vadd.f32 1e-05, %v967_v47 }
 0x2a1   :  { %2555 = vrsqrt.f32 %v968_v56 }
 0x2ae   :  { %v2556_v18 = vpop.eup %2555 }
 0x2af   :  { %v971_v30 = vmul.f32 %v2556_v18, %v970_v31  ;;  %v2206_v31 = vadd.s32 4294966528, %v3446_v43  ;;  %v2202_v18 = vadd.s32 4294966528, %v3517_v33  ;;  %v2120_v33 = vadd.s32 4294966784, %v3642_v34 }
 0x2b1   :  { %v975_v37 = vrot.slane %v971_v30, %v3247_v28  ;;  %vm1736_vm10 = vcmp.eq.s32.totalorder %v2206_v31, %v3443_v21  ;;  %vm1735_vm12 = vcmp.eq.s32.totalorder %v2206_v31, %v3432_v58  ;;  %v2121_v30 = vadd.s32 4294966784, %v3638_v22 }
 0x2b3   :  { %v976_v62 = vmul.f32 %v975_v37, %v3511_v45  ;;  %v977_v40 = vmul.f32 %v975_v37, %v3515_v48  ;;  %v978_v41 = vmul.f32 %v975_v37, %v3522_v2  ;;  %v979_v23 = vmul.f32 %v975_v37, %v3526_v5 }
 0x2b4   :  { %v980_v46 = vmul.f32 %v975_v37, %v3530_v27  ;;  %v981_v44 = vmul.f32 %v975_v37, %v3535_v19  ;;  %v982_v48 = vmul.f32 %v975_v37, %v3539_v14  ;;  %v983_v2 = vmul.f32 %v975_v37, %v3543_v25 }
 0x2b5   :  { %v997_v60 = vadd.f32 %v1967_v26, %v976_v62  ;;  %v998_v10 = vadd.f32 %v1967_v26, %v977_v40  ;;  %v999_v0 = vadd.f32 %v1967_v26, %v978_v41  ;;  %v1000_v1 = vadd.f32 %v1967_v26, %v979_v23 }
 0x2b6   :  { %v1001_v59 = vadd.f32 %v1967_v26, %v980_v46  ;;  %v1002_v45 = vadd.f32 %v1967_v26, %v981_v44  ;;  %v1003_v38 = vadd.f32 %v1967_v26, %v982_v48  ;;  %v1004_v42 = vadd.f32 %v1967_v26, %v983_v2 }
 0x2b7   :  { %1112 = vxpose.xlu0.b32.start [1/16] (narrow) %v997_v60, 32  ;;  %v984_v5 = vmul.f32 %v975_v37, %v3547_v53  ;;  %v985_v27 = vmul.f32 %v975_v37, %v3551_v6  ;;  %v986_v19 = vmul.f32 %v975_v37, %v3555_v35  ;;  %v987_v14 = vmul.f32 %v975_v37, %v3559_v49 }
 0x2b8   :  { %v988_v25 = vmul.f32 %v975_v37, %v3563_v63  ;;  %v989_v53 = vmul.f32 %v975_v37, %v3567_v57  ;;  %v990_v61 = vmul.f32 %v975_v37, %v3571_v9  ;;  %v991_v35 = vmul.f32 %v975_v37, %v3579_v7 }
 0x2b9   :  { %v1005_v52 = vadd.f32 %v1967_v26, %v984_v5  ;;  %v1006_v17 = vadd.f32 %v1967_v26, %v985_v27  ;;  %v1007_v12 = vadd.f32 %v1967_v26, %v986_v19  ;;  %v1008_v8 = vadd.f32 %v1967_v26, %v987_v14 }
 0x2ba   :  { %v1009_v4 = vadd.f32 %v1967_v26, %v988_v25  ;;  %v1010_v6 = vadd.f32 %v1967_v26, %v989_v53  ;;  %v1011_v47 = vadd.f32 %v1967_v26, %v990_v61  ;;  %v1012_v56 = vadd.f32 %v1967_v26, %v991_v35 }
 0x2bb   :  { %1113 = vxpose.xlu0.b32.cont [2/16] (narrow) %v998_v10, 32  ;;  %v2126_v49 = vadd.s32 4294966784, %v3446_v43  ;;  %v2125_v57 = vadd.s32 4294966784, %v3448_v16  ;;  %v2205_v9 = vadd.s32 4294966528, %v3448_v16  ;;  %v2124_v16 = vadd.s32 4294966784, %v3467_v36 }
 0x2bc   :  { %v2204_v7 = vadd.s32 4294966528, %v3467_v36  ;;  %v2123_v36 = vadd.s32 4294966784, %v3474_v55  ;;  %v2201_v37 = vadd.s32 4294966528, %v3638_v22  ;;  %v2200_v22 = vadd.s32 4294966528, %v3642_v34 }
 0x2bd   :  { %vm1516_vm9 = vcmp.eq.s32.totalorder %v2126_v49, %v3443_v21  ;;  %vm1515_vm11 = vcmp.eq.s32.totalorder %v2126_v49, %v3432_v58  ;;  %vm1514_vm13 = vcmp.eq.s32.totalorder %v2125_v57, %v3443_v21  ;;  %vm1734_vm14 = vcmp.eq.s32.totalorder %v2205_v9, %v3443_v21 }
 0x2be   :  { %vm1513_vm15 = vcmp.eq.s32.totalorder %v2125_v57, %v3432_v58  ;;  %vm1733_vm0 = vcmp.eq.s32.totalorder %v2205_v9, %v3432_v58  ;;  %vm1512_vm2 = vcmp.eq.s32.totalorder %v2124_v16, %v3443_v21  ;;  %vm1732_vm3 = vcmp.eq.s32.totalorder %v2204_v7, %v3443_v21 }
 0x2bf   :  { %1114 = vxpose.xlu0.b32.cont [3/16] (narrow) %v999_v0, 32  ;;  %vm1511_vm4 = vcmp.eq.s32.totalorder %v2124_v16, %v3432_v58  ;;  %vm1731_vm5 = vcmp.eq.s32.totalorder %v2204_v7, %v3432_v58  ;;  %vm1510_vm6 = vcmp.eq.s32.totalorder %v2123_v36, %v3443_v21  ;;  %v2119_v26 = vadd.s32 4294966784, %v3648_v3 }
 0x2c0   :  { %v2199_v34 = vadd.s32 4294966528, %v3648_v3  ;;  %v2118_v62 = vadd.s32 4294966784, %v3650_v20  ;;  %v2198_v3 = vadd.s32 4294966528, %v3650_v20  ;;  %v2117_v60 = vadd.s32 4294966784, %v3657_v11 }
 0x2c1   :  { %v2197_v20 = vadd.s32 4294966528, %v3657_v11  ;;  %v2116_v40 = vadd.s32 4294966784, %v3674_v29  ;;  %v2196_v11 = vadd.s32 4294966528, %v3674_v29  ;;  %v2115_v10 = vadd.s32 4294966784, %v3687_v32 }
 0x2c2   :  { %v2195_v29 = vadd.s32 4294966528, %v3687_v32  ;;  %v2114_v32 = vadd.s32 4294966784, %v3701_v13  ;;  %v2194_v41 = vadd.s32 4294966528, %v3701_v13  ;;  %v2113_v23 = vadd.s32 4294966784, %v3715_v50 }
 0x2c3   :  { %1115 = vxpose.xlu0.b32.cont [4/16] (narrow) %v1000_v1, 32  ;;  %v2193_v1 = vadd.s32 4294966528, %v3715_v50  ;;  %v2112_v13 = vadd.s32 4294966784, %v3729_v39  ;;  %v2192_v46 = vadd.s32 4294966528, %v3729_v39 }
 0x2c7   :  { %1116 = vxpose.xlu0.b32.cont [5/16] (narrow) %v1001_v59, 32 }
 0x2cb   :  { %1117 = vxpose.xlu0.b32.cont [6/16] (narrow) %v1002_v45, 32 }
 0x2cf   :  { %1118 = vxpose.xlu0.b32.cont [7/16] (narrow) %v1003_v38, 32 }
 0x2d3   :  { %1119 = vxpose.xlu0.b32.cont [8/16] (narrow) %v1004_v42, 32 }
 0x2d7   :  { %1120 = vxpose.xlu0.b32.cont [9/16] (narrow) %v1005_v52, 32 }
 0x2db   :  { %1121 = vxpose.xlu0.b32.cont [10/16] (narrow) %v1006_v17, 32 }
 0x2df   :  { %1122 = vxpose.xlu0.b32.cont [11/16] (narrow) %v1007_v12, 32 }
 0x2e3   :  { %1123 = vxpose.xlu0.b32.cont [12/16] (narrow) %v1008_v8, 32 }
 0x2e7   :  { %1124 = vxpose.xlu0.b32.cont [13/16] (narrow) %v1009_v4, 32 }
 0x2eb   :  { %1125 = vxpose.xlu0.b32.cont [14/16] (narrow) %v1010_v6, 32 }
 0x2ef   :  { %1126 = vxpose.xlu0.b32.cont [15/16] (narrow) %v1011_v47, 32 }
 0x2f3   :  { %1127 = vxpose.xlu0.b32.end [16/16] (narrow) %v1012_v56, 32 }
 0x333   :  { %v3831_v63 = vpop.trf.xlu0 }
 0x334   :  { %1209 = vmatmul.mubr.f32.vlgmr.msra.gmra.mxu1 %v3831_v63  ;;  %1428 = vmatmul.mubr.f32.vlgmr.msra.gmra.mxu0 %v3831_v63 }
 0x335   :  { %2161 = vmatpush1.msk.msra.mxu1 %vm1517_vm1, %v2595_v24  ;;  %2241 = vmatpush1.msk.msra.mxu0 %vm1737_vm8, %v2595_v24  ;;  %vm1509_vm1 = vcmp.eq.s32.totalorder %v2123_v36, %v3432_v58  ;;  %vm1729_vm8 = vcmp.eq.s32.totalorder %v2203_v54, %v3432_v58 }
 0x336   :  { %2162 = vmatprep.subr.msk.mxu1 %vm1516_vm9, %v2595_v24  ;;  %2242 = vmatprep.subr.msk.mxu0 %vm1736_vm10, %v2595_v24  ;;  %vm1508_vm9 = vcmp.eq.s32.totalorder %v2122_v51, %v3443_v21  ;;  %vm1728_vm10 = vcmp.eq.s32.totalorder %v2202_v18, %v3443_v21 }
 0x337   :  { %2163 = vmatpush1.msk.msra.mxu1 %vm1515_vm11, %v2595_v24  ;;  %2243 = vmatpush1.msk.msra.mxu0 %vm1735_vm12, %v2595_v24  ;;  %v3851_v43 = vpop.trf.xlu0  ;;  %vm1507_vm11 = vcmp.eq.s32.totalorder %v2122_v51, %v3432_v58  ;;  %vm1727_vm12 = vcmp.eq.s32.totalorder %v2202_v18, %v3432_v58 }
 0x338   :  { %1214 = vmatprep.mubr.f32.mxu1 %v2596_v15  ;;  %1433 = vmatprep.mubr.f32.mxu0 %v2596_v15 }
 0x339   :  { %2164 = vmatprep.subr.msk.mxu1 %vm1514_vm13, %v2595_v24  ;;  %2244 = vmatprep.subr.msk.mxu0 %vm1734_vm14, %v2595_v24  ;;  %vm1506_vm13 = vcmp.eq.s32.totalorder %v2121_v30, %v3443_v21  ;;  %vm1726_vm14 = vcmp.eq.s32.totalorder %v2201_v37, %v3443_v21 }
 0x33a   :  { %1215 = vmatmul.mubr.f32.gmra.mxu1 %v3851_v43  ;;  %1434 = vmatmul.mubr.f32.gmra.mxu0 %v3851_v43 }
 0x33b   :  { %2165 = vmatpush1.msk.msra.mxu1 %vm1513_vm15, %v2595_v24  ;;  %2245 = vmatpush1.msk.msra.mxu0 %vm1733_vm0, %v2595_v24  ;;  %v3877_v55 = vpop.trf.xlu0  ;;  %vm1505_vm15 = vcmp.eq.s32.totalorder %v2121_v30, %v3432_v58  ;;  %vm1725_vm0 = vcmp.eq.s32.totalorder %v2201_v37, %v3432_v58 }
 0x33c   :  { %2166 = vmatprep.subr.msk.mxu1 %vm1512_vm2, %v2595_v24  ;;  %2246 = vmatprep.subr.msk.mxu0 %vm1732_vm3, %v2595_v24  ;;  %vm1504_vm2 = vcmp.eq.s32.totalorder %v2120_v33, %v3443_v21  ;;  %vm1724_vm3 = vcmp.eq.s32.totalorder %v2200_v22, %v3443_v21 }
 0x33d   :  { %2167 = vmatpush1.msk.msra.mxu1 %vm1511_vm4, %v2595_v24  ;;  %2247 = vmatpush1.msk.msra.mxu0 %vm1731_vm5, %v2595_v24  ;;  %vm1503_vm4 = vcmp.eq.s32.totalorder %v2120_v33, %v3432_v58  ;;  %vm1723_vm5 = vcmp.eq.s32.totalorder %v2200_v22, %v3432_v58 }
 0x33e   :  { %1220 = vmatprep.mubr.f32.mxu1 %v2596_v15  ;;  %1439 = vmatprep.mubr.f32.mxu0 %v2596_v15 }
 0x33f   :  { %2168 = vmatprep.subr.msk.mxu1 %vm1510_vm6, %v2595_v24  ;;  %2248 = vmatprep.subr.msk.mxu0 %vm1730_vm7, %v2595_v24  ;;  %vm1502_vm6 = vcmp.eq.s32.totalorder %v2119_v26, %v3443_v21  ;;  %vm1722_vm7 = vcmp.eq.s32.totalorder %v2199_v34, %v3443_v21  ;;  %v1131_v0 = vpop.trf.xlu0 }
 0x340   :  { %1221 = vmatmul.mubr.f32.gmra.mxu1 %v3877_v55  ;;  %1440 = vmatmul.mubr.f32.gmra.mxu0 %v3877_v55 }
 0x341   :  { %2169 = vmatpush1.msk.msra.mxu1 %vm1509_vm1, %v2595_v24  ;;  %2249 = vmatpush1.msk.msra.mxu0 %vm1729_vm8, %v2595_v24  ;;  %vm1501_vm1 = vcmp.eq.s32.totalorder %v2119_v26, %v3432_v58  ;;  %vm1721_vm8 = vcmp.eq.s32.totalorder %v2199_v34, %v3432_v58 }
 0x342   :  { %2170 = vmatprep.subr.msk.mxu1 %vm1508_vm9, %v2595_v24  ;;  %2250 = vmatprep.subr.msk.mxu0 %vm1728_vm10, %v2595_v24  ;;  %vm1500_vm9 = vcmp.eq.s32.totalorder %v2118_v62, %v3443_v21  ;;  %vm1720_vm10 = vcmp.eq.s32.totalorder %v2198_v3, %v3443_v21 }
 0x343   :  { %2171 = vmatpush1.msk.msra.mxu1 %vm1507_vm11, %v2595_v24  ;;  %2251 = vmatpush1.msk.msra.mxu0 %vm1727_vm12, %v2595_v24  ;;  %vm1499_vm11 = vcmp.eq.s32.totalorder %v2118_v62, %v3432_v58  ;;  %vm1719_vm12 = vcmp.eq.s32.totalorder %v2198_v3, %v3432_v58 }
 0x344   :  { %2172 = vmatprep.subr.msk.mxu1 %vm1506_vm13, %v2595_v24  ;;  %2252 = vmatprep.subr.msk.mxu0 %vm1726_vm14, %v2595_v24  ;;  %vm1498_vm13 = vcmp.eq.s32.totalorder %v2117_v60, %v3443_v21  ;;  %vm1718_vm14 = vcmp.eq.s32.totalorder %v2197_v20, %v3443_v21 }
 0x345   :  { %2173 = vmatpush1.msk.msra.mxu1 %vm1505_vm15, %v2595_v24  ;;  %2253 = vmatpush1.msk.msra.mxu0 %vm1725_vm0, %v2595_v24  ;;  %vm1497_vm15 = vcmp.eq.s32.totalorder %v2117_v60, %v3432_v58  ;;  %vm1717_vm0 = vcmp.eq.s32.totalorder %v2197_v20, %v3432_v58 }
 0x346   :  { %2174 = vmatprep.subr.msk.mxu1 %vm1504_vm2, %v2595_v24  ;;  %2254 = vmatprep.subr.msk.mxu0 %vm1724_vm3, %v2595_v24  ;;  %vm1496_vm2 = vcmp.eq.s32.totalorder %v2116_v40, %v3443_v21  ;;  %vm1716_vm3 = vcmp.eq.s32.totalorder %v2196_v11, %v3443_v21 }
 0x347   :  { %2175 = vmatpush1.msk.msra.mxu1 %vm1503_vm4, %v2595_v24  ;;  %2255 = vmatpush1.msk.msra.mxu0 %vm1723_vm5, %v2595_v24  ;;  %vm1495_vm4 = vcmp.eq.s32.totalorder %v2116_v40, %v3432_v58  ;;  %vm1715_vm5 = vcmp.eq.s32.totalorder %v2196_v11, %v3432_v58 }
 0x348   :  { %2176 = vmatprep.subr.msk.mxu1 %vm1502_vm6, %v2595_v24  ;;  %2256 = vmatprep.subr.msk.mxu0 %vm1722_vm7, %v2595_v24  ;;  %vm1494_vm6 = vcmp.eq.s32.totalorder %v2115_v10, %v3443_v21  ;;  %vm1714_vm7 = vcmp.eq.s32.totalorder %v2195_v29, %v3443_v21 }
 0x349   :  { %2177 = vmatpush1.msk.msra.mxu1 %vm1501_vm1, %v2595_v24  ;;  %2257 = vmatpush1.msk.msra.mxu0 %vm1721_vm8, %v2595_v24  ;;  %vm1493_vm1 = vcmp.eq.s32.totalorder %v2115_v10, %v3432_v58  ;;  %vm1713_vm8 = vcmp.eq.s32.totalorder %v2195_v29, %v3432_v58 }
 0x34a   :  { %2178 = vmatprep.subr.msk.mxu1 %vm1500_vm9, %v2595_v24  ;;  %2258 = vmatprep.subr.msk.mxu0 %vm1720_vm10, %v2595_v24  ;;  %vm1492_vm9 = vcmp.eq.s32.totalorder %v2114_v32, %v3443_v21  ;;  %vm1712_vm10 = vcmp.eq.s32.totalorder %v2194_v41, %v3443_v21 }
 0x34b   :  { %2179 = vmatpush1.msk.msra.mxu1 %vm1499_vm11, %v2595_v24  ;;  %2259 = vmatpush1.msk.msra.mxu0 %vm1719_vm12, %v2595_v24  ;;  %vm1491_vm11 = vcmp.eq.s32.totalorder %v2114_v32, %v3432_v58  ;;  %vm1711_vm12 = vcmp.eq.s32.totalorder %v2194_v41, %v3432_v58 }
 0x34c   :  { %2180 = vmatprep.subr.msk.mxu1 %vm1498_vm13, %v2595_v24  ;;  %2260 = vmatprep.subr.msk.mxu0 %vm1718_vm14, %v2595_v24  ;;  %vm1490_vm13 = vcmp.eq.s32.totalorder %v2113_v23, %v3443_v21  ;;  %vm1710_vm14 = vcmp.eq.s32.totalorder %v2193_v1, %v3443_v21 }
 0x34d   :  { %2181 = vmatpush1.msk.msra.mxu1 %vm1497_vm15, %v2595_v24  ;;  %2261 = vmatpush1.msk.msra.mxu0 %vm1717_vm0, %v2595_v24  ;;  %vm1489_vm15 = vcmp.eq.s32.totalorder %v2113_v23, %v3432_v58  ;;  %vm1709_vm0 = vcmp.eq.s32.totalorder %v2193_v1, %v3432_v58 }
 0x34e   :  { %2182 = vmatprep.subr.msk.mxu1 %vm1496_vm2, %v2595_v24  ;;  %2262 = vmatprep.subr.msk.mxu0 %vm1716_vm3, %v2595_v24  ;;  %vm1488_vm2 = vcmp.eq.s32.totalorder %v2112_v13, %v3443_v21  ;;  %vm1708_vm3 = vcmp.eq.s32.totalorder %v2192_v46, %v3443_v21 }
 0x34f   :  { %2183 = vmatpush1.msk.msra.mxu1 %vm1495_vm4, %v2595_v24  ;;  %2263 = vmatpush1.msk.msra.mxu0 %vm1715_vm5, %v2595_v24  ;;  %vm1487_vm4 = vcmp.eq.s32.totalorder %v2112_v13, %v3432_v58  ;;  %vm1707_vm5 = vcmp.eq.s32.totalorder %v2192_v46, %v3432_v58 }
 0x350   :  { %2184 = vmatprep.subr.msk.mxu1 %vm1494_vm6, %v2595_v24  ;;  %2264 = vmatprep.subr.msk.mxu0 %vm1714_vm7, %v2595_v24 }
 0x351   :  { %1226 = vmatprep.mubr.f32.mxu1 %v2596_v15  ;;  %1445 = vmatprep.mubr.f32.mxu0 %v2596_v15 }
 0x352   :  { %2185 = vmatpush1.msk.msra.mxu1 %vm1493_vm1, %v2595_v24  ;;  %2265 = vmatpush1.msk.msra.mxu0 %vm1713_vm8, %v2595_v24 }
 0x353   :  { %1227 = vmatmul.mubr.f32.gmra.mxu1 %v1131_v0  ;;  %1446 = vmatmul.mubr.f32.gmra.mxu0 %v1131_v0 }
 0x354   :  { %2186 = vmatprep.subr.msk.mxu1 %vm1492_vm9, %v2595_v24  ;;  %2266 = vmatprep.subr.msk.mxu0 %vm1712_vm10, %v2595_v24 }
 0x355   :  { %2187 = vmatpush1.msk.msra.mxu1 %vm1491_vm11, %v2595_v24  ;;  %2267 = vmatpush1.msk.msra.mxu0 %vm1711_vm12, %v2595_v24 }
 0x356   :  { %2188 = vmatprep.subr.msk.mxu1 %vm1490_vm13, %v2595_v24  ;;  %2268 = vmatprep.subr.msk.mxu0 %vm1710_vm14, %v2595_v24 }
 0x357   :  { %2189 = vmatpush1.msk.msra.mxu1 %vm1489_vm15, %v2595_v24  ;;  %2269 = vmatpush1.msk.msra.mxu0 %vm1709_vm0, %v2595_v24 }
 0x358   :  { %2190 = vmatprep.subr.msk.mxu1 %vm1488_vm2, %v2595_v24  ;;  %2270 = vmatprep.subr.msk.mxu0 %vm1708_vm3, %v2595_v24 }
 0x359   :  { %2191 = vmatpush1.msk.msra.mxu1 %vm1487_vm4, %v2595_v24  ;;  %1647 = vmatprep.mubr.f32.mxu1 %v2596_v15 }
 0x35a   :  { %2271 = vmatpush1.msk.msra.mxu0 %vm1707_vm5, %v2595_v24  ;;  %1867 = vmatprep.mubr.f32.mxu0 %v2596_v15 }
 0x35b   :  { %1648 = vmatmul.mubr.f32.vlgmr.msra.gmra.mxu1 %v3831_v63  ;;  %1868 = vmatmul.mubr.f32.vlgmr.msra.gmra.mxu0 %v3831_v63 }
 0x35c   :  { %1653 = vmatprep.mubr.f32.mxu1 %v2596_v15  ;;  %1873 = vmatprep.mubr.f32.mxu0 %v2596_v15 }
 0x35f   :  { %1654 = vmatmul.mubr.f32.gmra.mxu1 %v3851_v43  ;;  %1874 = vmatmul.mubr.f32.gmra.mxu0 %v3851_v43 }
 0x360   :  { %1659 = vmatprep.mubr.f32.mxu1 %v2596_v15  ;;  %1879 = vmatprep.mubr.f32.mxu0 %v2596_v15 }
 0x363   :  { %1660 = vmatmul.mubr.f32.gmra.mxu1 %v3877_v55  ;;  %1880 = vmatmul.mubr.f32.gmra.mxu0 %v3877_v55 }
 0x364   :  { %1665 = vmatprep.mubr.f32.mxu1 %v2596_v15  ;;  %1885 = vmatprep.mubr.f32.mxu0 %v2596_v15 }
 0x367   :  { %1666 = vmatmul.mubr.f32.gmra.mxu1 %v1131_v0  ;;  %1886 = vmatmul.mubr.f32.gmra.mxu0 %v1131_v0 }
 0x3f4   :  { %v1210_v58 = vpop.f32.mrf.mxu1  ;;  %v1429_v21 = vpop.f32.mrf.mxu0 }
 0x3f6   :  { %v1212_v24 = vpop.f32.mrf.mxu1  ;;  %v1431_v50 = vpop.f32.mrf.mxu0 }
 0x3fa   :  { %v1216_v39 = vpop.f32.mrf.mxu1  ;;  %v1435_v59 = vpop.f32.mrf.mxu0 }
 0x3fc   :  { %v1218_v44 = vpop.f32.mrf.mxu1  ;;  %v1437_v45 = vpop.f32.mrf.mxu0 }
 0x400   :  { %v1222_v48 = vpop.f32.mrf.mxu1  ;;  %v1441_v38 = vpop.f32.mrf.mxu0 }
 0x401   :  { %v1231_v2 = vmax.f32 %v1222_v48, 1.0  ;;  %v1450_v42 = vmax.f32 %v1441_v38, 1.0 }
 0x402   :  { %v1224_v5 = vpop.f32.mrf.mxu1  ;;  %v1443_v52 = vpop.f32.mrf.mxu0 }
 0x403   :  { %2557 = vrcp.f32 %v1231_v2  ;;  %v1232_v27 = vmax.f32 %v1224_v5, 1.0  ;;  %v1451_v17 = vmax.f32 %v1443_v52, 1.0 }
 0x404   :  { %2559 = vrcp.f32 %v1450_v42 }
 0x405   :  { %2561 = vrcp.f32 %v1232_v27 }
 0x406   :  { %2563 = vrcp.f32 %v1451_v17 }
 0x410   :  { %v2558_v15 = vpop.eup %2557 }
 0x411   :  { %v2560_v19 = vpop.eup %2559  ;;  %v1238_v12 = vrot.slane %v2558_v15, %v3247_v28 }
 0x412   :  { %v2562_v14 = vpop.eup %2561  ;;  %v1457_v8 = vrot.slane %v2560_v19, %v3247_v28 }
 0x413   :  { %v2564_v25 = vpop.eup %2563  ;;  %v1243_v4 = vmul.f32 %v1238_v12, %v1210_v58  ;;  %v1245_v53 = vmul.f32 %v1238_v12, %v1216_v39  ;;  %v1242_v61 = vrot.slane %v2562_v14, %v3247_v28  ;;  %v1228_v6 = vpop.f32.mrf.mxu1 }
 0x414   :  { %v1447_v47 = vpop.f32.mrf.mxu0  ;;  %v1462_v35 = vmul.f32 %v1457_v8, %v1429_v21  ;;  %v1464_v56 = vmul.f32 %v1457_v8, %v1435_v59  ;;  %v1461_v49 = vrot.slane %v2564_v25, %v3247_v28 }
 0x415   :  { %1247 = vst [vmem:[#allocation2] sm:$0xff] %v1243_v4  ;;  %1249 = vst [vmem:[#allocation2 + $0x10] sm:$0xff] %v1245_v53  ;;  %v1244_v31 = vmul.f32 %v1242_v61, %v1212_v24  ;;  %v1246_v63 = vmul.f32 %v1242_v61, %v1218_v44  ;;  %v1229_v57 = vpop.f32.mrf.mxu1 }
 0x416   :  { %v1448_v9 = vpop.f32.mrf.mxu0  ;;  %1467 = vst [vmem:[#allocation2 + $0x20] sm:$0xff] %v1462_v35  ;;  %1469 = vst [vmem:[#allocation2 + $0x30] sm:$0xff] %v1464_v56  ;;  %v1463_v43 = vmul.f32 %v1461_v49, %v1431_v50  ;;  %v1465_v16 = vmul.f32 %v1461_v49, %v1437_v45 }
 0x417   :  { %1248 = vst [vmem:[#allocation2 + $0x8] sm:$0xff] %v1244_v31  ;;  %1250 = vst [vmem:[#allocation2 + $0x18] sm:$0xff] %v1246_v63 }
 0x418   :  { %1468 = vst [vmem:[#allocation2 + $0x28] sm:$0xff] %v1463_v43  ;;  %1470 = vst [vmem:[#allocation2 + $0x38] sm:$0xff] %v1465_v16 }
 0x41b   :  { %v1649_v7 = vpop.f32.mrf.mxu1  ;;  %v1869_v36 = vpop.f32.mrf.mxu0 }
 0x41d   :  { %v1651_v54 = vpop.f32.mrf.mxu1  ;;  %v1871_v55 = vpop.f32.mrf.mxu0 }
 0x41f   :  { %v1655_v51 = vpop.f32.mrf.mxu1  ;;  %v1875_v18 = vpop.f32.mrf.mxu0 }
 0x421   :  { %v1657_v30 = vpop.f32.mrf.mxu1  ;;  %v1877_v37 = vpop.f32.mrf.mxu0 }
 0x423   :  { %v1661_v33 = vpop.f32.mrf.mxu1  ;;  %v1881_v22 = vpop.f32.mrf.mxu0 }
 0x424   :  { %v1670_v26 = vmax.f32 %v1661_v33, 1.0  ;;  %v1890_v34 = vmax.f32 %v1881_v22, 1.0 }
 0x425   :  { %v1663_v62 = vpop.f32.mrf.mxu1  ;;  %v1883_v3 = vpop.f32.mrf.mxu0 }
 0x426   :  { %2565 = vrcp.f32 %v1670_v26  ;;  %v1671_v60 = vmax.f32 %v1663_v62, 1.0  ;;  %v1891_v20 = vmax.f32 %v1883_v3, 1.0 }
 0x427   :  { %2567 = vrcp.f32 %v1890_v34  ;;  %v1667_v40 = vpop.f32.mrf.mxu1  ;;  %v1887_v11 = vpop.f32.mrf.mxu0 }
 0x428   :  { %2569 = vrcp.f32 %v1671_v60 }
 0x429   :  { %2571 = vrcp.f32 %v1891_v20  ;;  %v1668_v10 = vpop.f32.mrf.mxu1  ;;  %v1888_v29 = vpop.f32.mrf.mxu0 }
 0x433   :  { %v2566_v32 = vpop.eup %2565 }
 0x434   :  { %v2568_v41 = vpop.eup %2567  ;;  %v1677_v0 = vrot.slane %v2566_v32, %v3247_v28 }
 0x435   :  { %v2570_v23 = vpop.eup %2569  ;;  %v1897_v1 = vrot.slane %v2568_v41, %v3247_v28 }
 0x436   :  { %v2572_v13 = vpop.eup %2571  ;;  %v1682_v46 = vmul.f32 %v1677_v0, %v1649_v7  ;;  %v1684_v58 = vmul.f32 %v1677_v0, %v1655_v51  ;;  %v1681_v21 = vrot.slane %v2570_v23, %v3247_v28 }
 0x437   :  { %v1902_v24 = vmul.f32 %v1897_v1, %v1869_v36  ;;  %v1904_v50 = vmul.f32 %v1897_v1, %v1875_v18  ;;  %v1901_v39 = vrot.slane %v2572_v13, %v3247_v28 }
 0x438   :  { %1687 = vst [vmem:[#allocation2 + $0x40] sm:$0xff] %v1682_v46  ;;  %1689 = vst [vmem:[#allocation2 + $0x50] sm:$0xff] %v1684_v58  ;;  %v1683_v59 = vmul.f32 %v1681_v21, %v1651_v54  ;;  %v1685_v44 = vmul.f32 %v1681_v21, %v1657_v30 }
 0x439   :  { %1907 = vst [vmem:[#allocation2 + $0x60] sm:$0xff] %v1902_v24  ;;  %1909 = vst [vmem:[#allocation2 + $0x70] sm:$0xff] %v1904_v50  ;;  %v1903_v45 = vmul.f32 %v1901_v39, %v1871_v55  ;;  %v1905_v48 = vmul.f32 %v1901_v39, %v1877_v37 }
 0x43a   :  { %1688 = vst [vmem:[#allocation2 + $0x48] sm:$0xff] %v1683_v59  ;;  %1690 = vst [vmem:[#allocation2 + $0x58] sm:$0xff] %v1685_v44 }
 0x43b   :  { %1908 = vst [vmem:[#allocation2 + $0x68] sm:$0xff] %v1903_v45  ;;  %1910 = vst [vmem:[#allocation2 + $0x78] sm:$0xff] %v1905_v48 }
 0x43c   :  { %2584 = shalt.err (!%p2581_p4)
}
 0x43d   :  { %s2598_s9 = smov 256   ;;  %s2599_s10 = smov 16  }
 0x43e   :  { %1922 = dma.vmem_to_hbm [thread:$0]  %s1917_s7, 2048, %s4031_s3, [#allocation3], %s2598_s9, %s2598_s9, %s2599_s10  }
 0x43f   :  { %2593 = dma.done.wait [#allocation3], 2048  }
 0x440   :  { %2594 = vsyncadd [#allocation3], 4294965248 }
 0x441   :  { %1926 = vsyncpa [#allocation3], 1 }

</bundles_post_ra>
